<compile_context>
chip_gen: v7x
topology: tpu7x:2x2x1
jax: 0.10.0
libtpu: 0.0.40
codegen_flags: <defaults>
</compile_context>

<pallas_src>
import functools

import jax
import jax.numpy as jnp
from jax.experimental import pallas as pl
from jax.experimental.pallas import tpu as pltpu

# ----------------------------- configuration -----------------------------
B = 2            # batch size
K = 3            # -> 1 + K candidate news per sample
NUM_CLICKED = 5  # clicked news per user
T = 8            # tokens per news text ("title+abstract+category")
VOCAB = 50       # vocabulary size
E = 32           # word embedding dim
F = 32           # num_filters == news embedding dim
Q = 16           # query_vector_dim of additive attention
WIN = 3          # conv window size
PAD = (WIN - 1) // 2   # "same" padding


# ----------------------------- Pallas kernel -----------------------------
def _naml_kernel(cand_ref, clk_ref, emb_ref, w_ref, small_ref, out_ref,
                 *, t, f, q, win):
    """One batch element per grid step: encode its (1+K) candidate and Nc clicked
    news items in one batched block, then user attention + dot-product scoring.

    cand_ref : (1, (1+K)*t, 1) int32  candidate tokens, one per sublane
    clk_ref  : (1, Nc*t, 1)    int32  clicked tokens,   one per sublane
    emb_ref  : (V, E)  f32            word-embedding table
    w_ref    : (E, win*F + 2Q) f32    [ conv (im2col, k-major) | word-att W | user-att W ]
    small_ref: (8, 128) f32           rows: conv_b, word_att_b, word_att_q,
                                            user_att_b, user_att_q
    out_ref  : (1, 1+K, 1) f32        click logits for this batch element
    """
    ct = cand_ref.shape[1]
    kt = clk_ref.shape[1]
    c, nc = ct // t, kt // t
    n_items = c + nc
    nt = ct + kt
    v = emb_ref.shape[0]

    # ---- all tokens of this sample (candidates first, clicked second) ----
    tok = jnp.concatenate([cand_ref[...].reshape(ct, 1),
                           clk_ref[...].reshape(kt, 1)], axis=0)          # (nt, 1)

    # ---- embedding lookup fully in-kernel: exact one-hot matmul (MXU) ----
    oh = (tok == jax.lax.broadcasted_iota(jnp.int32, (nt, v), 1)).astype(jnp.float32)
    x = jnp.dot(oh, emb_ref[...], preferred_element_type=jnp.float32)     # (nt, E)

    # ---- Conv1d(window=3, same pad) = ONE wide matmul + 2 masked row shifts ----
    w = w_ref[...]
    y = jnp.dot(x, w[:, :win * f], preferred_element_type=jnp.float32)    # (nt, win*F)
    y0, y1, y2 = y[:, :f], y[:, f:2 * f], y[:, 2 * f:3 * f]
    j = jax.lax.broadcasted_iota(jnp.int32, (nt, f), 0) % t               # pos inside item
    zrow = jnp.zeros((1, f), jnp.float32)
    left = jnp.concatenate([zrow, y0[:nt - 1, :]], axis=0)                # token j-1 via W_0
    right = jnp.concatenate([y2[1:, :], zrow], axis=0)                    # token j+1 via W_2
    h = y1 + jnp.where(j >= 1, left, 0.0) + jnp.where(j <= t - 2, right, 0.0)
    h = jnp.maximum(h + small_ref[0:1, :f], 0.0)                          # (nt, F) ReLU

    # ---- word-level additive attention (t == 8 -> per-item scores in one tile) ----
    waw = w[:, win * f:win * f + q]
    a = jnp.tanh(jnp.dot(h, waw, preferred_element_type=jnp.float32)
                 + small_ref[1:2, :q])                                    # (nt, Q)
    s = jnp.sum(a * small_ref[2:3, :q], axis=-1, keepdims=True)           # (nt, 1)
    s3 = s.reshape(n_items, t, 1)                                         # free reshape (t==8)
    p = jnp.exp(s3 - jnp.max(s3, axis=1, keepdims=True))
    alpha = p / jnp.sum(p, axis=1, keepdims=True)                         # (n_items, t, 1)
    news = jnp.sum(alpha * h.reshape(n_items, t, f), axis=1)              # (n_items, F)

    cand_vec = news[:c, :]                                                # (1+K, F)
    clk_vec = news[c:, :]                                                 # (Nc, F)

    # ---- UserEncoder: additive attention over clicked-news vectors ----
    uaw = w[:, win * f + q:win * f + 2 * q]
    au = jnp.tanh(jnp.dot(clk_vec, uaw, preferred_element_type=jnp.float32)
                  + small_ref[3:4, :q])                                   # (Nc, Q)
    su = jnp.sum(au * small_ref[4:5, :q], axis=-1, keepdims=True)         # (Nc, 1)
    pu = jnp.exp(su - jnp.max(su, axis=0, keepdims=True))
    beta = pu / jnp.sum(pu, axis=0, keepdims=True)                        # (Nc, 1)
    user = jnp.sum(beta * clk_vec, axis=0, keepdims=True)                 # (1, F)

    # ---- DotProductClickPredictor ----
    out_ref[...] = jnp.sum(cand_vec * user, axis=-1, keepdims=True).reshape(1, c, 1)


# ----------------------------- wrapper -----------------------------
def naml_forward(packed, candidate_tokens, clicked_tokens):
    """candidate_tokens: (B, 1+K, T) int32, clicked_tokens: (B, Nc, T) int32
    -> click logits (B, 1+K).  One fused Pallas call, zero XLA prologue kernels."""
    b, c, t = candidate_tokens.shape
    nc = clicked_tokens.shape[1]
    emb, weights, small = packed["emb"], packed["weights"], packed["small"]
    v, e = emb.shape
    f, q, win = F, Q, WIN

    # Free (bitcast-level) reshapes: tokens arrive one-per-sublane so the kernel
    # never has to move them from lanes to sublanes.
    cand_col = candidate_tokens.reshape(b, c * t, 1)
    clk_col = clicked_tokens.reshape(b, nc * t, 1)

    nt = (c + nc) * t
    cost = pl.CostEstimate(
        flops=int(b * (2 * nt * (v * e + e * win * f + f * q)
                       + 2 * nc * f * q + 2 * c * f)),
        transcendentals=int(b * (nt * (q + 1) + nc * (q + 1))),
        bytes_accessed=int(4 * (emb.size + weights.size + small.size)
                           + 4 * (cand_col.size + clk_col.size) + 4 * b * c),
    )

    kernel = functools.partial(_naml_kernel, t=t, f=f, q=q, win=win)
    out = pl.pallas_call(
        kernel,
        out_shape=jax.ShapeDtypeStruct((b, c, 1), jnp.float32),
        grid=(b,),
        in_specs=[
            pl.BlockSpec((1, c * t, 1), lambda i: (i, 0, 0)),
            pl.BlockSpec((1, nc * t, 1), lambda i: (i, 0, 0)),
            pl.BlockSpec((v, e), lambda i: (0, 0)),          # params: same block
            pl.BlockSpec(weights.shape, lambda i: (0, 0)),   # every step -> fetched once
            pl.BlockSpec(small.shape, lambda i: (0, 0)),
        ],
        out_specs=pl.BlockSpec((1, c, 1), lambda i: (i, 0, 0)),
        compiler_params=pltpu.CompilerParams(dimension_semantics=("parallel",)),
        cost_estimate=cost,
    )(cand_col, clk_col, emb, weights, small)
    return out.reshape(b, c)


# ----------------------------- params -----------------------------
def init_params(key):
    """Natural (PyTorch-like) parameter layout.
    conv_w[k, e, f] == torch Conv1d weight[f, e, k] (same "same"-padding math)."""
    ks = jax.random.split(key, 9)
    s = 0.1
    return {
        "word_embedding": jax.random.normal(ks[0], (VOCAB, E), jnp.float32) * s,
        "conv_w": jax.random.normal(ks[1], (WIN, E, F), jnp.float32) * s,
        "conv_b": jax.random.normal(ks[2], (F,), jnp.float32) * s,
        "word_att_w": jax.random.normal(ks[3], (F, Q), jnp.float32) * s,
        "word_att_b": jax.random.normal(ks[4], (Q,), jnp.float32) * s,
        "word_att_q": jax.random.normal(ks[5], (Q,), jnp.float32) * s,
        "user_att_w": jax.random.normal(ks[6], (F, Q), jnp.float32) * s,
        "user_att_b": jax.random.normal(ks[7], (Q,), jnp.float32) * s,
        "user_att_q": jax.random.normal(ks[8], (Q,), jnp.float32) * s,
    }


def pack_params(params):
    """One-time (load-time) repack into the three dense operands the fused kernel
    consumes.  Call it ONCE outside the jitted forward (weight packing, like QKV
    fusion, is static model prep — not per-step work)."""
    assert E == F, "weight packing assumes word-embedding dim == num_filters"
    # im2col-ordered conv weight: conv_wide[e, k*F + f] = conv_w[k, e, f]
    conv_wide = jnp.transpose(params["conv_w"], (1, 0, 2)).reshape(E, WIN * F)
    weights = jnp.concatenate(
        [conv_wide, params["word_att_w"], params["user_att_w"]],
        axis=1).astype(jnp.float32)                       # (E, WIN*F + 2Q) = (32, 128)
    small = jnp.zeros((8, 128), jnp.float32)              # one (8,128) tile of scalars
    small = small.at[0, :F].set(params["conv_b"])
    small = small.at[1, :Q].set(params["word_att_b"])
    small = small.at[2, :Q].set(params["word_att_q"])
    small = small.at[3, :Q].set(params["user_att_b"])
    small = small.at[4, :Q].set(params["user_att_q"])
    return {"emb": params["word_embedding"].astype(jnp.float32),
            "weights": weights, "small": small}


# ----------------------------- pure-JAX reference -----------------------------
def naml_reference(params, candidate_tokens, clicked_tokens):
    """Straightforward transcription of the PyTorch module (eval mode)."""
    def encode(tokens):
        emb = jnp.take(params["word_embedding"], tokens, axis=0)        # (..., T, E)
        pad = [(0, 0)] * (emb.ndim - 2) + [(PAD, PAD), (0, 0)]
        xpad = jnp.pad(emb, pad)
        y = sum(jnp.einsum('...te,ef->...tf', xpad[..., k:k + T, :],
                           params["conv_w"][k]) for k in range(WIN))
        h = jnp.maximum(y + params["conv_b"], 0.0)                      # (..., T, F)
        tt = jnp.tanh(jnp.einsum('...tf,fq->...tq', h, params["word_att_w"])
                      + params["word_att_b"])
        s = jnp.sum(tt * params["word_att_q"], axis=-1)                 # (..., T)
        a = jax.nn.softmax(s, axis=-1)
        return jnp.sum(a[..., None] * h, axis=-2)                       # (..., F)

    cand = encode(candidate_tokens)                                     # (B, 1+K, F)
    clk = encode(clicked_tokens)                                        # (B, Nc, F)
    tu = jnp.tanh(jnp.einsum('bnf,fq->bnq', clk, params["user_att_w"])
                  + params["user_att_b"])
    su = jnp.sum(tu * params["user_att_q"], axis=-1)                    # (B, Nc)
    beta = jax.nn.softmax(su, axis=-1)
    user = jnp.sum(beta[..., None] * clk, axis=1)                       # (B, F)
    return jnp.sum(cand * user[:, None, :], axis=-1)                    # (B, 1+K)


if __name__ == "__main__":
    key = jax.random.PRNGKey(0)
    pkey, ckey, lkey = jax.random.split(key, 3)
    params = init_params(pkey)
    packed = pack_params(params)   # one-time weight packing, outside the jitted forward
    candidate_tokens = jax.random.randint(ckey, (B, 1 + K, T), 0, VOCAB,
                                          dtype=jnp.int32)
    clicked_tokens = jax.random.randint(lkey, (B, NUM_CLICKED, T), 0, VOCAB,
                                        dtype=jnp.int32)

    out = jax.block_until_ready(
        jax.jit(naml_forward)(packed, candidate_tokens, clicked_tokens))
    assert out.shape == (B, 1 + K) and out.dtype == jnp.float32

    ref = jax.block_until_ready(
        jax.jit(naml_reference)(params, candidate_tokens, clicked_tokens))
    # Kernel and reference differ only by MXU default-precision rounding paths
    # (one-hot-matmul lookup vs exact gather); well inside 1e-3 at these scales.
    assert jnp.max(jnp.abs(out - ref)) < 1e-3, (out, ref)

    print("KERNEL_OK")
</pallas_src>

<mosaic_0001>
module attributes {stable_mosaic.version = 11 : i64} {
  func.func @_naml_kernel(%arg0: i32, %arg1: memref<1x32x1xi32, #tpu.memory_space<vmem>>, %arg2: memref<1x40x1xi32, #tpu.memory_space<vmem>>, %arg3: memref<50x32xf32, #tpu.memory_space<vmem>>, %arg4: memref<32x128xf32, #tpu.memory_space<vmem>>, %arg5: memref<8x128xf32, #tpu.memory_space<vmem>>, %arg6: memref<1x4x1xf32, #tpu.memory_space<vmem>>) attributes {dimension_semantics = [#tpu.dimension_semantics<parallel>], iteration_bounds = array<i64: 2>, scalar_prefetch = 0 : i64, scratch_operands = 0 : i64, tpu.core_type = #tpu.core_type<tc>, window_params = [{transform_indices = @transform_0, window_bounds = array<i64: 1, 32, 1>}, {transform_indices = @transform_1, window_bounds = array<i64: 1, 40, 1>}, {pipeline_mode = #tpu.pipeline_mode<synchronous>, transform_indices = @transform_2, window_bounds = array<i64: 50, 32>}, {pipeline_mode = #tpu.pipeline_mode<synchronous>, transform_indices = @transform_3, window_bounds = array<i64: 32, 128>}, {pipeline_mode = #tpu.pipeline_mode<synchronous>, transform_indices = @transform_4, window_bounds = array<i64: 8, 128>}, {transform_indices = @transform_5, window_bounds = array<i64: 1, 4, 1>}]} {
    %c0 = arith.constant 0 : index
    %c0_0 = arith.constant 0 : index
    %c0_1 = arith.constant 0 : index
    %0 = vector.load %arg1[%c0, %c0_0, %c0_1] : memref<1x32x1xi32, #tpu.memory_space<vmem>>, vector<1x32x1xi32>
    %1 = vector.shape_cast %0 : vector<1x32x1xi32> to vector<32x1xi32>
    %c0_2 = arith.constant 0 : index
    %c0_3 = arith.constant 0 : index
    %c0_4 = arith.constant 0 : index
    %2 = vector.load %arg2[%c0_2, %c0_3, %c0_4] : memref<1x40x1xi32, #tpu.memory_space<vmem>>, vector<1x40x1xi32>
    %3 = vector.shape_cast %2 : vector<1x40x1xi32> to vector<40x1xi32>
    %4 = tpu.concatenate %1, %3 in 0 : vector<32x1xi32>, vector<40x1xi32> -> vector<72x1xi32>
    %5 = tpu.iota {dimensions = array<i32: 1>} : vector<72x50xi32>
    %6 = vector.broadcast %4 : vector<72x1xi32> to vector<72x50xi32>
    %7 = arith.cmpi eq, %6, %5 : vector<72x50xi32>
    %8 = arith.extui %7 : vector<72x50xi1> to vector<72x50xi32>
    %9 = arith.sitofp %8 : vector<72x50xi32> to vector<72x50xf32>
    %c0_5 = arith.constant 0 : index
    %c0_6 = arith.constant 0 : index
    %10 = vector.load %arg3[%c0_5, %c0_6] : memref<50x32xf32, #tpu.memory_space<vmem>>, vector<50x32xf32>
    %cst = arith.constant dense<0.000000e+00> : vector<72x32xf32>
    %11 = tpu.matmul %9, %10, %cst {dimension_numbers = #tpu.dot_dimension_numbers<[1], [0], [0], [1], [0, 0, 1, 1], [], []>} : vector<72x50xf32>, vector<50x32xf32>, vector<72x32xf32> -> vector<72x32xf32>
    %c0_7 = arith.constant 0 : index
    %c0_8 = arith.constant 0 : index
    %12 = vector.load %arg4[%c0_7, %c0_8] : memref<32x128xf32, #tpu.memory_space<vmem>>, vector<32x128xf32>
    %13 = vector.extract_strided_slice %12 {offsets = [0, 0], sizes = [32, 96], strides = [1, 1]} : vector<32x128xf32> to vector<32x96xf32>
    %cst_9 = arith.constant dense<0.000000e+00> : vector<72x96xf32>
    %14 = tpu.matmul %11, %13, %cst_9 {dimension_numbers = #tpu.dot_dimension_numbers<[1], [0], [0], [1], [0, 0, 1, 1], [], []>} : vector<72x32xf32>, vector<32x96xf32>, vector<72x96xf32> -> vector<72x96xf32>
    %15 = vector.extract_strided_slice %14 {offsets = [0, 0], sizes = [72, 32], strides = [1, 1]} : vector<72x96xf32> to vector<72x32xf32>
    %16 = vector.extract_strided_slice %14 {offsets = [0, 32], sizes = [72, 32], strides = [1, 1]} : vector<72x96xf32> to vector<72x32xf32>
    %17 = vector.extract_strided_slice %14 {offsets = [0, 64], sizes = [72, 32], strides = [1, 1]} : vector<72x96xf32> to vector<72x32xf32>
    %18 = tpu.iota {dimensions = array<i32: 0>} : vector<72x32xi32>
    %c8_i32 = arith.constant 8 : i32
    %c0_i32 = arith.constant 0 : i32
    %19 = arith.cmpi eq, %c8_i32, %c0_i32 : i32
    %c1_i32 = arith.constant 1 : i32
    %20 = arith.select %19, %c1_i32, %c8_i32 : i32
    %21 = vector.broadcast %20 : i32 to vector<72x32xi32>
    %22 = arith.remsi %18, %21 : vector<72x32xi32>
    %c0_i32_10 = arith.constant 0 : i32
    %23 = vector.broadcast %c0_i32_10 : i32 to vector<72x32xi32>
    %24 = arith.cmpi ne, %22, %23 : vector<72x32xi32>
    %c0_i32_11 = arith.constant 0 : i32
    %25 = vector.broadcast %c0_i32_11 : i32 to vector<72x32xi32>
    %26 = arith.cmpi slt, %22, %25 : vector<72x32xi32>
    %c0_i32_12 = arith.constant 0 : i32
    %27 = arith.cmpi slt, %20, %c0_i32_12 : i32
    %28 = vector.broadcast %27 : i1 to vector<72x32xi1>
    %29 = vector.broadcast %28 : vector<72x32xi1> to vector<72x32xi1>
    %30 = arith.xori %26, %29 : vector<72x32xi1>
    %31 = arith.andi %30, %24 : vector<72x32xi1>
    %32 = vector.broadcast %20 : i32 to vector<72x32xi32>
    %33 = arith.addi %22, %32 : vector<72x32xi32>
    %34 = arith.select %31, %33, %22 : vector<72x32xi1>, vector<72x32xi32>
    %cst_13 = arith.constant 0.000000e+00 : f32
    %35 = vector.broadcast %cst_13 : f32 to vector<1x32xf32>
    %36 = vector.extract_strided_slice %15 {offsets = [0, 0], sizes = [71, 32], strides = [1, 1]} : vector<72x32xf32> to vector<71x32xf32>
    %37 = tpu.concatenate %35, %36 in 0 : vector<1x32xf32>, vector<71x32xf32> -> vector<72x32xf32>
    %38 = vector.extract_strided_slice %17 {offsets = [1, 0], sizes = [71, 32], strides = [1, 1]} : vector<72x32xf32> to vector<71x32xf32>
    %39 = tpu.concatenate %38, %35 in 0 : vector<71x32xf32>, vector<1x32xf32> -> vector<72x32xf32>
    %c1_i32_14 = arith.constant 1 : i32
    %40 = vector.broadcast %c1_i32_14 : i32 to vector<72x32xi32>
    %41 = arith.cmpi sge, %34, %40 : vector<72x32xi32>
    %cst_15 = arith.constant 0.000000e+00 : f32
    %42 = vector.broadcast %cst_15 : f32 to vector<72x32xf32>
    %43 = arith.select %41, %37, %42 : vector<72x32xi1>, vector<72x32xf32>
    %44 = arith.addf %16, %43 : vector<72x32xf32>
    %c6_i32 = arith.constant 6 : i32
    %45 = vector.broadcast %c6_i32 : i32 to vector<72x32xi32>
    %46 = arith.cmpi sle, %34, %45 : vector<72x32xi32>
    %cst_16 = arith.constant 0.000000e+00 : f32
    %47 = vector.broadcast %cst_16 : f32 to vector<72x32xf32>
    %48 = arith.select %46, %39, %47 : vector<72x32xi1>, vector<72x32xf32>
    %49 = arith.addf %44, %48 : vector<72x32xf32>
    %c0_17 = arith.constant 0 : index
    %c0_18 = arith.constant 0 : index
    %50 = vector.load %arg5[%c0_17, %c0_18] : memref<8x128xf32, #tpu.memory_space<vmem>>, vector<1x32xf32>
    %51 = vector.broadcast %50 : vector<1x32xf32> to vector<72x32xf32>
    %52 = arith.addf %49, %51 : vector<72x32xf32>
    %cst_19 = arith.constant 0.000000e+00 : f32
    %53 = vector.broadcast %cst_19 : f32 to vector<72x32xf32>
    %54 = arith.maximumf %52, %53 : vector<72x32xf32>
    %55 = vector.extract_strided_slice %12 {offsets = [0, 96], sizes = [32, 16], strides = [1, 1]} : vector<32x128xf32> to vector<32x16xf32>
    %cst_20 = arith.constant dense<0.000000e+00> : vector<72x16xf32>
    %56 = tpu.matmul %54, %55, %cst_20 {dimension_numbers = #tpu.dot_dimension_numbers<[1], [0], [0], [1], [0, 0, 1, 1], [], []>} : vector<72x32xf32>, vector<32x16xf32>, vector<72x16xf32> -> vector<72x16xf32>
    %c1 = arith.constant 1 : index
    %c0_21 = arith.constant 0 : index
    %57 = vector.load %arg5[%c1, %c0_21] : memref<8x128xf32, #tpu.memory_space<vmem>>, vector<1x16xf32>
    %58 = vector.broadcast %57 : vector<1x16xf32> to vector<72x16xf32>
    %59 = arith.addf %56, %58 : vector<72x16xf32>
    %60 = math.tanh %59 : vector<72x16xf32>
    %c2 = arith.constant 2 : index
    %c0_22 = arith.constant 0 : index
    %61 = vector.load %arg5[%c2, %c0_22] : memref<8x128xf32, #tpu.memory_space<vmem>>, vector<1x16xf32>
    %62 = vector.broadcast %61 : vector<1x16xf32> to vector<72x16xf32>
    %63 = arith.mulf %60, %62 : vector<72x16xf32>
    %cst_23 = arith.constant dense<0.000000e+00> : vector<72xf32>
    %64 = vector.multi_reduction <add>, %63, %cst_23 [1] : vector<72x16xf32> to vector<72xf32>
    %65 = vector.shape_cast %64 : vector<72xf32> to vector<72x1xf32>
    %66 = vector.shape_cast %65 : vector<72x1xf32> to vector<9x8x1xf32>
    %cst_24 = arith.constant dense<0xFF800000> : vector<9x1xf32>
    %67 = vector.multi_reduction <maximumf>, %66, %cst_24 [1] : vector<9x8x1xf32> to vector<9x1xf32>
    %68 = vector.shape_cast %67 : vector<9x1xf32> to vector<9x1x1xf32>
    %69 = vector.broadcast %68 : vector<9x1x1xf32> to vector<9x8x1xf32>
    %70 = arith.subf %66, %69 : vector<9x8x1xf32>
    %71 = math.exp %70 : vector<9x8x1xf32>
    %cst_25 = arith.constant dense<0.000000e+00> : vector<9x1xf32>
    %72 = vector.multi_reduction <add>, %71, %cst_25 [1] : vector<9x8x1xf32> to vector<9x1xf32>
    %73 = vector.shape_cast %72 : vector<9x1xf32> to vector<9x1x1xf32>
    %74 = vector.broadcast %73 : vector<9x1x1xf32> to vector<9x8x1xf32>
    %75 = arith.divf %71, %74 : vector<9x8x1xf32>
    %76 = vector.shape_cast %54 : vector<72x32xf32> to vector<9x8x32xf32>
    %77 = vector.broadcast %75 : vector<9x8x1xf32> to vector<9x8x32xf32>
    %78 = arith.mulf %77, %76 : vector<9x8x32xf32>
    %cst_26 = arith.constant dense<0.000000e+00> : vector<9x32xf32>
    %79 = vector.multi_reduction <add>, %78, %cst_26 [1] : vector<9x8x32xf32> to vector<9x32xf32>
    %80 = vector.extract_strided_slice %79 {offsets = [0, 0], sizes = [4, 32], strides = [1, 1]} : vector<9x32xf32> to vector<4x32xf32>
    %81 = vector.extract_strided_slice %79 {offsets = [4, 0], sizes = [5, 32], strides = [1, 1]} : vector<9x32xf32> to vector<5x32xf32>
    %82 = vector.extract_strided_slice %12 {offsets = [0, 112], sizes = [32, 16], strides = [1, 1]} : vector<32x128xf32> to vector<32x16xf32>
    %cst_27 = arith.constant dense<0.000000e+00> : vector<5x16xf32>
    %83 = tpu.matmul %81, %82, %cst_27 {dimension_numbers = #tpu.dot_dimension_numbers<[1], [0], [0], [1], [0, 0, 1, 1], [], []>} : vector<5x32xf32>, vector<32x16xf32>, vector<5x16xf32> -> vector<5x16xf32>
    %c3 = arith.constant 3 : index
    %c0_28 = arith.constant 0 : index
    %84 = vector.load %arg5[%c3, %c0_28] : memref<8x128xf32, #tpu.memory_space<vmem>>, vector<1x16xf32>
    %85 = vector.broadcast %84 : vector<1x16xf32> to vector<5x16xf32>
    %86 = arith.addf %83, %85 : vector<5x16xf32>
    %87 = math.tanh %86 : vector<5x16xf32>
    %c4 = arith.constant 4 : index
    %c0_29 = arith.constant 0 : index
    %88 = vector.load %arg5[%c4, %c0_29] : memref<8x128xf32, #tpu.memory_space<vmem>>, vector<1x16xf32>
    %89 = vector.broadcast %88 : vector<1x16xf32> to vector<5x16xf32>
    %90 = arith.mulf %87, %89 : vector<5x16xf32>
    %cst_30 = arith.constant dense<0.000000e+00> : vector<5xf32>
    %91 = vector.multi_reduction <add>, %90, %cst_30 [1] : vector<5x16xf32> to vector<5xf32>
    %92 = vector.shape_cast %91 : vector<5xf32> to vector<5x1xf32>
    %cst_31 = arith.constant dense<0xFF800000> : vector<1xf32>
    %93 = vector.multi_reduction <maximumf>, %92, %cst_31 [0] : vector<5x1xf32> to vector<1xf32>
    %94 = vector.shape_cast %93 : vector<1xf32> to vector<1x1xf32>
    %95 = vector.broadcast %94 : vector<1x1xf32> to vector<5x1xf32>
    %96 = arith.subf %92, %95 : vector<5x1xf32>
    %97 = math.exp %96 : vector<5x1xf32>
    %cst_32 = arith.constant dense<0.000000e+00> : vector<1xf32>
    %98 = vector.multi_reduction <add>, %97, %cst_32 [0] : vector<5x1xf32> to vector<1xf32>
    %99 = vector.shape_cast %98 : vector<1xf32> to vector<1x1xf32>
    %100 = vector.broadcast %99 : vector<1x1xf32> to vector<5x1xf32>
    %101 = arith.divf %97, %100 : vector<5x1xf32>
    %102 = vector.broadcast %101 : vector<5x1xf32> to vector<5x32xf32>
    %103 = arith.mulf %102, %81 : vector<5x32xf32>
    %cst_33 = arith.constant dense<0.000000e+00> : vector<32xf32>
    %104 = vector.multi_reduction <add>, %103, %cst_33 [0] : vector<5x32xf32> to vector<32xf32>
    %105 = vector.shape_cast %104 : vector<32xf32> to vector<1x32xf32>
    %106 = vector.broadcast %105 : vector<1x32xf32> to vector<4x32xf32>
    %107 = arith.mulf %80, %106 : vector<4x32xf32>
    %cst_34 = arith.constant dense<0.000000e+00> : vector<4xf32>
    %108 = vector.multi_reduction <add>, %107, %cst_34 [1] : vector<4x32xf32> to vector<4xf32>
    %109 = vector.shape_cast %108 : vector<4xf32> to vector<4x1xf32>
    %110 = vector.shape_cast %109 : vector<4x1xf32> to vector<1x4x1xf32>
    %c0_35 = arith.constant 0 : index
    %c0_36 = arith.constant 0 : index
    %c0_37 = arith.constant 0 : index
    %111 = vector.load %arg6[%c0_35, %c0_36, %c0_37] : memref<1x4x1xf32, #tpu.memory_space<vmem>>, vector<1x4x1xf32>
    tpu.vector_store %arg6[%c0_35, %c0_36, %c0_37], %110 {strides = array<i32>} : memref<1x4x1xf32, #tpu.memory_space<vmem>>, vector<1x4x1xf32>,
    return
  }
  func.func @transform_0(%arg0: i32) -> (i32, i32, i32) {
    %c0_i32 = arith.constant 0 : i32
    %c0_i32_0 = arith.constant 0 : i32
    %c0_i32_1 = arith.constant 0 : i32
    return %arg0, %c0_i32, %c0_i32_0 : i32, i32, i32
  }
  func.func @transform_1(%arg0: i32) -> (i32, i32, i32) {
    %c0_i32 = arith.constant 0 : i32
    %c0_i32_0 = arith.constant 0 : i32
    %c0_i32_1 = arith.constant 0 : i32
    return %arg0, %c0_i32, %c0_i32_0 : i32, i32, i32
  }
  func.func @transform_2(%arg0: i32) -> (i32, i32) {
    %c0_i32 = arith.constant 0 : i32
    %c0_i32_0 = arith.constant 0 : i32
    %c0_i32_1 = arith.constant 0 : i32
    return %c0_i32, %c0_i32_0 : i32, i32
  }
  func.func @transform_3(%arg0: i32) -> (i32, i32) {
    %c0_i32 = arith.constant 0 : i32
    %c0_i32_0 = arith.constant 0 : i32
    %c0_i32_1 = arith.constant 0 : i32
    return %c0_i32, %c0_i32_0 : i32, i32
  }
  func.func @transform_4(%arg0: i32) -> (i32, i32) {
    %c0_i32 = arith.constant 0 : i32
    %c0_i32_0 = arith.constant 0 : i32
    %c0_i32_1 = arith.constant 0 : i32
    return %c0_i32, %c0_i32_0 : i32, i32
  }
  func.func @transform_5(%arg0: i32) -> (i32, i32, i32) {
    %c0_i32 = arith.constant 0 : i32
    %c0_i32_0 = arith.constant 0 : i32
    %c0_i32_1 = arith.constant 0 : i32
    return %arg0, %c0_i32, %c0_i32_0 : i32, i32, i32
  }
}

</mosaic_0001>

<bundles_post_ra>
// kernel: naml_forward.1
= control target key start
LH: loop header
LB: loop body
LE: loop exit
PB: predicated region body
PF: predicated region fallthrough
CT: control target
= control target key end

     0   :  { %s2023_s18 = smov 0   ;;  %s2508_s0 = inlined_call_operand.vmem [shape: s32[2,32,1], index: 0, kind: input, shape index: {}]   ;;  %s2509_s1 = inlined_call_operand.vmem [shape: s32[2,40,1], index: 1, kind: input, shape index: {}]   ;;  %s2510_s2 = inlined_call_operand.vmem [shape: f32[50,32], index: 2, kind: input, shape index: {}]   ;;  %s2511_s3 = inlined_call_operand.vmem [shape: f32[32,128], index: 3, kind: input, shape index: {}]   ;;  %s2512_s4 = inlined_call_operand.vmem [shape: f32[8,128], index: 4, kind: input, shape index: {}]   ;;  %s2513_s5 = inlined_call_operand.vmem [shape: f32[2,4,1], index: 5, kind: output, shape index: {}]  }
   0x1 LB: > { %s1625_s19 = sadd.s32 4294967295, %s1984_s18   ;;  %p1629_p0 = scmp.ge.s32.totalorder %s1984_s18, 1  ;;  %s1984_s18 = sphi %s2023_s18, %s15_s18  }
   0x2   : > { %p197_p1 = scmp.lt.s32.totalorder %s1984_s18, 3 }
   0x4   : > { %p198_p2 = pnand %p1629_p0, %p197_p1 }
   0x5   : > { %p229_p3 = scmp.lt.s32.totalorder (!%p198_p2), %s1625_s19, 1  ;;  %v308_v0 = vld [vmem:[%s2510_s2] sm:$0xff] (!%p198_p2)  ;;  %v309_v1 = vld [vmem:[%s2510_s2 + $0x8] sm:$0xff] (!%p198_p2)  ;;  %v1986_v2 = vmov (!%p198_p2), 0   ;;  %v310_v4 = vld [vmem:[%s2510_s2 + $0x10] sm:$0xff] (!%p198_p2)  ;;  %v1987_v6 = vmov (!%p198_p2), 0.0|0.0   ;;  %v252_v28 = vlaneseq (!%p198_p2) }
   0x6   : > { %201 = sbr.rel (%p198_p2) target bundleno = 2223 (0x8af), region = 40  ;;  %1897 = vset.pattern.permute.xlu1 (!%p198_p2), %v1986_v2  ;;  %1896 = vset.pattern.permute.xlu0 (!%p198_p2), %v1986_v2  ;;  %v1850_v3 = vpack.c.bf16 (!%p198_p2), %v309_v1, %v308_v0  ;;  %v311_v5 = vld [vmem:[%s2510_s2 + $0x18] sm:$0xff] (!%p198_p2)  ;;  %v312_v8 = vld [vmem:[%s2510_s2 + $0x20] sm:$0xff] (!%p198_p2)  ;;  %v313_v9 = vld [vmem:[%s2510_s2 + $0x28] sm:$0xff] (!%p198_p2)  ;;  %vm1988_vm0 = vmmov (!%p198_p2), 0   ;;  %v1989_v15 = vmov (!%p198_p2), 0.0  }
   0x7   : > { %1849 = vmatprep.subr.bf16.mxu0 (!%p198_p2), %v1987_v6  ;;  %1876 = vmatprep.subr.bf16.mxu1 (!%p198_p2), %v1987_v6  ;;  %v1853_v7 = vpack.c.bf16 (!%p198_p2), %v311_v5, %v310_v4  ;;  %v1856_v14 = vpack.c.bf16 (!%p198_p2), %v313_v9, %v312_v8  ;;  %v314_v18 = vld [vmem:[%s2510_s2 + $0x30] sm:$0x3] (!%p198_p2)  ;;  %vm343_vm1 = vcmask (!%p198_p2), 1041408   ;;  %v2075_v22 = vld [vmem:[%s2511_s3] sm:$0xff] (!%p198_p2)  ;;  %v2080_v23 = vld [vmem:[%s2511_s3 + $0x8] sm:$0xff] (!%p198_p2)  ;;  %v253_v29 = vand.u32 (!%p198_p2), 127, %v252_v28 }
   0x8   : > { %1851 = vmatpush3.bf16.msra.mxu0 (!%p198_p2), %v1850_v3  ;;  %1741 = vmatprep.mubr.msk.f32.mxu0 (!%p198_p2), %vm1988_vm0, %v1989_v15  ;;  %v1859_v24 = vpack.c.bf16 (!%p198_p2), %v2080_v23, %v2075_v22  ;;  %v2087_v25 = vld [vmem:[%s2511_s3 + $0x10] sm:$0xff] (!%p198_p2)  ;;  %v2092_v26 = vld [vmem:[%s2511_s3 + $0x18] sm:$0xff] (!%p198_p2)  ;;  %vm315_vm2 = vcmask (!%p198_p2), 408576   ;;  %vm461_vm12 = vcmask (!%p198_p2), 261120   ;;  %v2165_v2 = vshrl.u32 (!%p198_p2), %v252_v28, 7  ;;  %s1990_s27 = smov (!%p198_p2), 32  }
   0x9   : > { %1852 = vmatprep.subr.bf16.mxu0 (!%p198_p2), %v1987_v6  ;;  %1785 = vmatprep.mubr.msk.f32.mxu1 (!%p198_p2), %vm1988_vm0, %v1989_v15  ;;  %v1862_v27 = vpack.c.bf16 (!%p198_p2), %v2092_v26, %v2087_v25  ;;  %vm726_vm13 = vcmask (!%p198_p2), 1040384   ;;  %vm754_vm15 = vcmask (!%p198_p2), 1046528   ;;  %s1992_s10 = smov (!%p198_p2), 16  }
   0xa   : > { %1878 = vmatpush3.bf16.msra.mxu1 (!%p198_p2), %v1859_v24  ;;  %v601_v3 = vadd.s32 (!%p198_p2), 8, %v2165_v2  ;;  %v613_v4 = vand.u32 (!%p198_p2), 7, %v2165_v2 }
   0xb   : > { %1877 = vmatprep.subr.bf16.mxu1 (!%p198_p2), %v1987_v6 }
   0xc   : > { %1854 = vmatpush3.bf16.msra.mxu0 (!%p198_p2), %v1853_v7  ;;  %v620_v7 = vand.u32 (!%p198_p2), 7, %v601_v3  ;;  %vm782_vm14 = vcmp.ge.s32.totalorder (!%p198_p2), %v613_v4, 1 }
   0xd   : > { %s2543_s19 = smov (!%p229_p3, %s1625_s19), 1  ;;  %1855 = vmatprep.subr.bf16.mxu0 %v1987_v6 }
   0xe   : > { %s1679_s28 = sshll.u32 %s2543_s19, 5  ;;  %s1880_s7 = smul.u32 40, %s2543_s19  ;;  %1879 = vmatpush3.bf16.msra.mxu1 %v1862_v27 }
   0xf   : > { %s233_s6 = scalar_lea.vmem %s2508_s0, %s1679_s28  ;;  %1864 = vmatprep.subr.bf16.mxu1 %v1987_v6  ;;  %s1991_s28 = smov 96  }
  0x10   : > { %v245_v10 = vld [vmem:[%s233_s6 + $0x10] sm:$0xff]  ;;  %v243_v11 = vld [vmem:[%s233_s6] sm:$0xff]  ;;  %v246_v12 = vld [vmem:[%s233_s6 + $0x18] sm:$0xff]  ;;  %s238_s14 = scalar_lea.vmem %s2509_s1, %s1880_s7  ;;  %1857 = vmatpush3.bf16.msra.mxu0 %v1856_v14  ;;  %s1633_s15 = sshll.u32 %s2543_s19, 2 }
  0x11   : > { %261 = vperm.xlu1 %1897, %v245_v10   ;;  %255 = vperm.xlu0 %1896, %v243_v11   ;;  %v244_v13 = vld [vmem:[%s233_s6 + $0x8] sm:$0xff]  ;;  %v247_v17 = vld [vmem:[%s238_s14] sm:$0xff]  ;;  %v250_v19 = vld [vmem:[%s238_s14 + $0x18] sm:$0xff]  ;;  %v602_v10 = vadd.s32 16, %v2165_v2  ;;  %s242_s20 = scalar_lea.vmem %s2513_s5, %s1633_s15 }
  0x12   : > { %v248_v16 = vld [vmem:[%s238_s14 + $0x8] sm:$0xff]  ;;  %1739 = vmatprep.subr.mxu0 %v1989_v15  ;;  %v249_v20 = vld [vmem:[%s238_s14 + $0x10] sm:$0xff]  ;;  %v251_v21 = vld [vmem:[%s238_s14 + $0x20] sm:$0xff] }
  0x14   : > { %1740 = vmatpush3.msk.msra.mxu0 %vm343_vm1, %v314_v18  ;;  %vm2176_vm1 = vcmp.le.s32.totalorder %v613_v4, 6 }
  0x15   : > { %264 = vperm.xlu1 %1897, %v246_v12   ;;  %258 = vperm.xlu0 %1896, %v244_v13  }
  0x16   : > { %1858 = vmatprep.subr.bf16.mxu0 %v1987_v6 }
  0x19   : > { %270 = vperm.xlu1 %1897, %v248_v16   ;;  %267 = vperm.xlu0 %1896, %v247_v17   ;;  %v603_v17 = vadd.s32 24, %v2165_v2  ;;  %v607_v16 = vadd.s32 56, %v2165_v2 }
  0x1d   : > { %276 = vperm.xlu1 %1897, %v250_v19   ;;  %273 = vperm.xlu0 %1896, %v249_v20  }
  0x21   : > { %279 = vperm.xlu0 %1896, %v251_v21  }
  0x90   : > { %v256_v30 = vpop.permute.xlu0 %255  ;;  %v262_v32 = vpop.permute.xlu1 %261 }
  0x91   : > { %vm281_vm3 = vcmp.eq.s32.totalorder %v256_v30, %v253_v29  ;;  %vm283_vm4 = vcmp.eq.s32.totalorder %v262_v32, %v253_v29  ;;  %v662_v32 = vand.u32 7, %v607_v16 }
  0x92   : > { %v1634_v31 = vsel %vm281_vm3, 1.0, %v1989_v15  ;;  %v1636_v35 = vsel %vm283_vm4, 1.0, %v1989_v15  ;;  %vm2197_vm3 = vcmp.le.s32.totalorder %v620_v7, 6 }
  0x93   : > { %1742 = vmatmul.mubr.msk.f32.vlgmr.msra.gmra.mrb[0].mxu0 %vm315_vm2, %v1634_v31 }
  0x94   : > { %v259_v33 = vpop.permute.xlu0 %258  ;;  %1744 = vmatprep.mubr.msk.f32.mxu0 %vm1988_vm0, %v1989_v15  ;;  %1860 = vmatpush3.bf16.msra.mxu0 %v1859_v24  ;;  %v265_v36 = vpop.permute.xlu1 %264  ;;  %v627_v24 = vand.u32 7, %v602_v10 }
  0x95   : > { %vm282_vm5 = vcmp.eq.s32.totalorder %v259_v33, %v253_v29  ;;  %1861 = vmatprep.subr.bf16.mxu0 %v1987_v6  ;;  %vm284_vm6 = vcmp.eq.s32.totalorder %v265_v36, %v253_v29  ;;  %v634_v33 = vand.u32 7, %v603_v17 }
  0x96   : > { %v1635_v34 = vsel %vm282_vm5, 1.0, %v1989_v15  ;;  %v1637_v38 = vsel %vm284_vm6, 1.0, %v1989_v15  ;;  %vm2205_vm4 = vcmp.ge.s32.totalorder %v627_v24, 1  ;;  %vm2219_vm5 = vcmp.le.s32.totalorder %v627_v24, 6 }
  0x97   : > { %1745 = vmatmul.mubr.msk.f32.gmra.mrb[2].mxu0 %vm315_vm2, %v1635_v34  ;;  %vm2225_vm6 = vcmp.ge.s32.totalorder %v634_v33, 1 }
  0x98   : > { %1747 = vmatprep.mubr.msk.f32.mxu0 %vm1988_vm0, %v1989_v15  ;;  %1863 = vmatpush3.bf16.msra.mxu0 %v1862_v27  ;;  %v268_v37 = vpop.permute.xlu0 %267  ;;  %v271_v39 = vpop.permute.xlu1 %270 }
  0x99   : > { %1870 = vmatprep.subr.bf16.mxu0 %v1987_v6  ;;  %vm285_vm7 = vcmp.eq.s32.totalorder %v268_v37, %v253_v29  ;;  %vm286_vm8 = vcmp.eq.s32.totalorder %v271_v39, %v253_v29  ;;  %v1662_v39 = vld [vmem:[%s2512_s4] ss:$0 sm:$0xff] }
  0x9a   : > { %v1638_v40 = vsel %vm285_vm7, 1.0, %v1989_v15  ;;  %v1639_v42 = vsel %vm286_vm8, 1.0, %v1989_v15  ;;  %vm2240_vm7 = vcmp.le.s32.totalorder %v634_v33, 6  ;;  %v608_v33 = vadd.s32 64, %v2165_v2 }
  0x9b   : > { %1748 = vmatmul.mubr.msk.f32.gmra.mrb[4].mxu0 %vm315_vm2, %v1636_v35 }
  0x9c   : > { %1750 = vmatprep.mubr.msk.f32.mxu0 %vm1988_vm0, %v1989_v15  ;;  %v274_v41 = vpop.permute.xlu0 %273  ;;  %v277_v43 = vpop.permute.xlu1 %276 }
  0x9d   : > { %vm287_vm9 = vcmp.eq.s32.totalorder %v274_v41, %v253_v29  ;;  %vm288_vm10 = vcmp.eq.s32.totalorder %v277_v43, %v253_v29 }
  0x9e   : > { %v1640_v44 = vsel %vm287_vm9, 1.0, %v1989_v15  ;;  %v1641_v46 = vsel %vm288_vm10, 1.0, %v1989_v15 }
  0x9f   : > { %1751 = vmatmul.mubr.msk.f32.gmra.mrb[6].mxu0 %vm315_vm2, %v1637_v38  ;;  %v604_v38 = vadd.s32 32, %v2165_v2 }
  0xa0   : > { %1753 = vmatprep.mubr.msk.f32.mxu0 %vm1988_vm0, %v1989_v15  ;;  %v280_v45 = vpop.permute.xlu0 %279 }
  0xa1   : > { %vm289_vm11 = vcmp.eq.s32.totalorder %v280_v45, %v253_v29 }
  0xa2   : > { %v1642_v47 = vsel %vm289_vm11, 1.0, %v1989_v15 }
  0xa3   : > { %1754 = vmatmul.mubr.msk.f32.gmra.mrb[8].mxu0 %vm315_vm2, %v1638_v40 }
  0xa4   : > { %1756 = vmatprep.mubr.msk.f32.mxu0 %vm1988_vm0, %v1989_v15 }
  0xa7   : > { %1757 = vmatmul.mubr.msk.f32.gmra.mrb[10].mxu0 %vm315_vm2, %v1639_v42 }
  0xa8   : > { %1759 = vmatprep.mubr.msk.f32.mxu0 %vm1988_vm0, %v1989_v15 }
  0xab   : > { %1760 = vmatmul.mubr.msk.f32.gmra.mrb[12].mxu0 %vm315_vm2, %v1640_v44  ;;  %v669_v44 = vand.u32 7, %v608_v33 }
  0xac   : > { %1762 = vmatprep.mubr.msk.f32.mxu0 %vm1988_vm0, %v1989_v15 }
  0xaf   : > { %1763 = vmatmul.mubr.msk.f32.gmra.mrb[14].mxu0 %vm315_vm2, %v1641_v46 }
  0xb0   : > { %1765 = vmatprep.mubr.msk.f32.mxu0 %vm1988_vm0, %v1989_v15 }
  0xb3   : > { %1766 = vmatmul.mubr.msk.f32.gmra.mrb[16].mxu0 %vm315_vm2, %v1642_v47  ;;  %vm2180_vm2 = vcmp.ge.s32.totalorder %v620_v7, 1 }
  0xb4   : > { %1776 = vmatprep.mubr.msk.f32.mxu0 %vm1988_vm0, %v1989_v15 }
 0x166   : > { %v413_v48 = vpop.f32.mrb[0].mxu0 }
 0x167   : > { %v1743_v49 = vpop.f32.mrb[1].mxu0  ;;  %1777 = vmatmul.mubr.msk.f32.vlgmr.msra.gmra.mrb[18].mxu0 %vm461_vm12, %v413_v48 }
 0x168   : > { %1779 = vmatprep.mubr.msk.f32.mxu0 %vm1988_vm0, %v1989_v15 }
 0x16a   : > { %v418_v50 = vpop.f32.mrb[2].mxu0 }
 0x16b   : > { %v1746_v51 = vpop.f32.mrb[3].mxu0  ;;  %1780 = vmatmul.mubr.msk.f32.gmra.mrb[20].mxu0 %vm461_vm12, %v418_v50  ;;  %v641_v50 = vand.u32 7, %v604_v38 }
 0x16c   : > { %1782 = vmatprep.mubr.msk.f32.mxu0 %vm1988_vm0, %v1989_v15  ;;  %v605_v51 = vadd.s32 40, %v2165_v2 }
 0x16d   : > { %vm2251_vm8 = vcmp.ge.s32.totalorder %v641_v50, 1  ;;  %vm2261_vm9 = vcmp.le.s32.totalorder %v641_v50, 6 }
 0x16e   : > { %v423_v52 = vpop.f32.mrb[4].mxu0 }
 0x16f   : > { %1783 = vmatmul.mubr.msk.f32.gmra.mrb[22].mxu0 %vm461_vm12, %v423_v52  ;;  %v1749_v53 = vpop.f32.mrb[5].mxu0 }
 0x170   : > { %1846 = vmatprep.mubr.msk.f32.mxu0 %vm1988_vm0, %v1989_v15 }
 0x172   : > { %v428_v54 = vpop.f32.mrb[6].mxu0 }
 0x173   : > { %v1752_v55 = vpop.f32.mrb[7].mxu0  ;;  %1786 = vmatmul.mubr.msk.f32.vlgmr.msra.gmra.mrb[0].mxu1 %vm461_vm12, %v428_v54 }
 0x174   : > { %1788 = vmatprep.mubr.msk.f32.mxu1 %vm1988_vm0, %v1989_v15 }
 0x176   : > { %v433_v56 = vpop.f32.mrb[8].mxu0 }
 0x177   : > { %v1755_v57 = vpop.f32.mrb[9].mxu0  ;;  %1789 = vmatmul.mubr.msk.f32.gmra.mrb[2].mxu1 %vm461_vm12, %v433_v56 }
 0x178   : > { %1791 = vmatprep.mubr.msk.f32.mxu1 %vm1988_vm0, %v1989_v15 }
 0x17a   : > { %v438_v58 = vpop.f32.mrb[10].mxu0 }
 0x17b   : > { %v1758_v59 = vpop.f32.mrb[11].mxu0  ;;  %1792 = vmatmul.mubr.msk.f32.gmra.mrb[4].mxu1 %vm461_vm12, %v438_v58  ;;  %v606_v58 = vadd.s32 48, %v2165_v2 }
 0x17c   : > { %1794 = vmatprep.mubr.msk.f32.mxu1 %vm1988_vm0, %v1989_v15 }
 0x17e   : > { %v443_v60 = vpop.f32.mrb[12].mxu0 }
 0x17f   : > { %v1761_v61 = vpop.f32.mrb[13].mxu0  ;;  %1795 = vmatmul.mubr.msk.f32.gmra.mrb[6].mxu1 %vm461_vm12, %v443_v60 }
 0x180   : > { %1797 = vmatprep.mubr.msk.f32.mxu1 %vm1988_vm0, %v1989_v15 }
 0x182   : > { %v448_v62 = vpop.f32.mrb[14].mxu0 }
 0x183   : > { %v1764_v63 = vpop.f32.mrb[15].mxu0  ;;  %1798 = vmatmul.mubr.msk.f32.gmra.mrb[8].mxu1 %vm461_vm12, %v448_v62 }
 0x184   : > { %1800 = vmatprep.mubr.msk.f32.mxu1 %vm1988_vm0, %v1989_v15  ;;  %v648_v63 = vand.u32 7, %v605_v51 }
 0x186   : > { %v453_v0 = vpop.f32.mrb[16].mxu0  ;;  %vm2271_vm10 = vcmp.ge.s32.totalorder %v648_v63, 1  ;;  %vm2282_vm11 = vcmp.le.s32.totalorder %v648_v63, 6 }
 0x187   : > { %v1767_v1 = vpop.f32.mrb[17].mxu0  ;;  %1801 = vmatmul.mubr.msk.f32.gmra.mrb[10].mxu1 %vm461_vm12, %v453_v0 }
 0x188   : > { %1811 = vmatprep.mubr.msk.f32.mxu1 %vm1988_vm0, %v1989_v15 }
 0x23a   : > { %v2169_v5 = vpop.f32.mrb[18].mxu0 }
 0x23b   : > { %v727_v8 = vrot.slane %v2169_v5, 7  ;;  %v1778_v9 = vpop.f32.mrb[19].mxu0  ;;  %v755_v18 = vrot.slane %v2169_v5, 1 }
 0x23c   : > { %v655_v9 = vand.u32 7, %v606_v58 }
 0x23d   : > { %v753_v11 = vsel %vm726_vm13, 0.0, %v727_v8 }
 0x23e   : > { %v2174_v12 = vpop.f32.mrb[20].mxu0  ;;  %v791_v13 = vsel %vm782_vm14, %v753_v11, 0.0  ;;  %vm2288_vm14 = vcmp.ge.s32.totalorder %v655_v9, 1 }
 0x23f   : > { %v728_v19 = vrot.slane %v2174_v12, 7  ;;  %v756_v20 = vrot.slane %v2174_v12, 1  ;;  %809 = vrot.lane.b32.xlu1 %v791_v13, %s1990_s27  ;;  %v1781_v21 = vpop.f32.mrb[21].mxu0 }
 0x241   : > { %v757_v27 = vsel %vm754_vm15, %v755_v18, %v756_v20  ;;  %v729_v28 = vsel %vm726_vm13, %v727_v8, %v728_v19 }
 0x242   : > { %v2191_v29 = vpop.f32.mrb[22].mxu0  ;;  %v854_v30 = vsel %vm2176_vm1, %v757_v27, 0.0  ;;  %v792_v31 = vsel %vm2180_vm2, %v729_v28, 0.0  ;;  %vm2303_vm1 = vcmp.le.s32.totalorder %v655_v9, 6  ;;  %vm2313_vm2 = vcmp.ge.s32.totalorder %v662_v32, 1 }
 0x243   : > { %v730_v34 = vrot.slane %v2191_v29, 7  ;;  %v758_v35 = vrot.slane %v2191_v29, 1  ;;  %872 = vrot.lane.b32.xlu0 %v854_v30, %s1991_s28  ;;  %811 = vrot.lane.b32.xlu1 %v792_v31, %s1990_s27  ;;  %v1784_v36 = vpop.f32.mrb[23].mxu0 }
 0x245   : > { %v759_v40 = vsel %vm754_vm15, %v756_v20, %v758_v35  ;;  %v731_v41 = vsel %vm726_vm13, %v728_v19, %v730_v34 }
 0x246   : > { %v2215_v42 = vpop.f32.mrb[0].mxu1  ;;  %v855_v43 = vsel %vm2197_vm3, %v759_v40, 0.0  ;;  %v793_v45 = vsel %vm2205_vm4, %v731_v41, 0.0  ;;  %vm852_vm3 = vcmp.le.s32.totalorder %v662_v32, 6  ;;  %vm853_vm4 = vcmp.le.s32.totalorder %v669_v44, 6 }
 0x247   : > { %v732_v47 = vrot.slane %v2215_v42, 7  ;;  %v760_v48 = vrot.slane %v2215_v42, 1  ;;  %v1787_v49 = vpop.f32.mrb[1].mxu1  ;;  %914 = vrot.lane.b32.xlu0 %v1662_v39, %s1990_s27  ;;  %874 = vrot.lane.b32.xlu1 %v855_v43, %s1991_s28 }
 0x249   : > { %v761_v52 = vsel %vm754_vm15, %v758_v35, %v760_v48  ;;  %v733_v53 = vsel %vm726_vm13, %v730_v34, %v732_v47 }
 0x24a   : > { %v2236_v54 = vpop.f32.mrb[2].mxu1  ;;  %v856_v55 = vsel %vm2219_vm5, %v761_v52, 0.0  ;;  %v794_v57 = vsel %vm2225_vm6, %v733_v53, 0.0  ;;  %vm790_vm5 = vcmp.ge.s32.totalorder %v669_v44, 1  ;;  %vm1400_vm6 = vcmask 1042434  }
 0x24b   : > { %v734_v59 = vrot.slane %v2236_v54, 7  ;;  %v762_v60 = vrot.slane %v2236_v54, 1  ;;  %v1790_v61 = vpop.f32.mrb[3].mxu1  ;;  %876 = vrot.lane.b32.xlu1 %v856_v55, %s1991_s28  ;;  %813 = vrot.lane.b32.xlu0 %v793_v45, %s1990_s27 }
 0x24c   : > { %v2342_v61 = vpack.i.bf16 %v2092_v26, %v2087_v25 }
 0x24d   : > { %v763_v0 = vsel %vm754_vm15, %v760_v48, %v762_v60  ;;  %v735_v1 = vsel %vm726_vm13, %v732_v47, %v734_v59 }
 0x24e   : > { %v2257_v3 = vpop.f32.mrb[4].mxu1  ;;  %v857_v4 = vsel %vm2240_vm7, %v763_v0, 0.0  ;;  %v795_v8 = vsel %vm2251_vm8, %v735_v1, 0.0  ;;  %vm1402_vm7 = vcmask 1043459   ;;  %vm1404_vm8 = vcmask 1044484  }
 0x24f   : > { %v736_v10 = vrot.slane %v2257_v3, 7  ;;  %v764_v11 = vrot.slane %v2257_v3, 1  ;;  %v1793_v13 = vpop.f32.mrb[5].mxu1  ;;  %878 = vrot.lane.b32.xlu1 %v857_v4, %s1991_s28  ;;  %815 = vrot.lane.b32.xlu0 %v794_v57, %s1990_s27 }
 0x251   : > { %v765_v17 = vsel %vm754_vm15, %v762_v60, %v764_v11  ;;  %v737_v18 = vsel %vm726_vm13, %v734_v59, %v736_v10  ;;  %v2338_v60 = vpack.i.bf16 %v2080_v23, %v2075_v22 }
 0x252   : > { %v2278_v19 = vpop.f32.mrb[6].mxu1  ;;  %v858_v20 = vsel %vm2261_vm9, %v765_v17, 0.0  ;;  %v796_v24 = vsel %vm2271_vm10, %v737_v18, 0.0  ;;  %vm1499_vm9 = vcmask 126976   ;;  %vm1525_vm10 = vcmask 258048  }
 0x253   : > { %v738_v28 = vrot.slane %v2278_v19, 7  ;;  %v766_v30 = vrot.slane %v2278_v19, 1  ;;  %v1796_v31 = vpop.f32.mrb[7].mxu1  ;;  %880 = vrot.lane.b32.xlu1 %v858_v20, %s1991_s28  ;;  %817 = vrot.lane.b32.xlu0 %v795_v8, %s1990_s27 }
 0x255   : > { %v767_v34 = vsel %vm754_vm15, %v764_v11, %v766_v30  ;;  %v739_v35 = vsel %vm726_vm13, %v736_v10, %v738_v28 }
 0x256   : > { %v2299_v36 = vpop.f32.mrb[8].mxu1  ;;  %v859_v37 = vsel %vm2282_vm11, %v767_v34, 0.0  ;;  %v797_v39 = vsel %vm2288_vm14, %v739_v35, 0.0  ;;  %vm1554_vm11 = vcmask 257024   ;;  %vm1558_vm14 = vcmask 3072  }
 0x257   : > { %v740_v40 = vrot.slane %v2299_v36, 7  ;;  %v768_v2 = vrot.slane %v2299_v36, 1  ;;  %v1799_v41 = vpop.f32.mrb[9].mxu1  ;;  %882 = vrot.lane.b32.xlu1 %v859_v37, %s1991_s28  ;;  %819 = vrot.lane.b32.xlu0 %v796_v24, %s1990_s27 }
 0x259   : > { %v769_v45 = vsel %vm754_vm15, %v766_v30, %v768_v2  ;;  %v741_v46 = vsel %vm726_vm13, %v738_v28, %v740_v40 }
 0x25a   : > { %v2319_v47 = vpop.f32.mrb[10].mxu1  ;;  %v860_v48 = vsel %vm2303_vm1, %v769_v45, 0.0  ;;  %v798_v49 = vsel %vm2313_vm2, %v741_v46, 0.0 }
 0x25b   : > { %v742_v50 = vrot.slane %v2319_v47, 7  ;;  %v770_v51 = vrot.slane %v2319_v47, 1  ;;  %v1802_v52 = vpop.f32.mrb[11].mxu1  ;;  %884 = vrot.lane.b32.xlu1 %v860_v48, %s1991_s28  ;;  %821 = vrot.lane.b32.xlu0 %v797_v39, %s1990_s27 }
 0x25d   : > { %v771_v53 = vsel %vm754_vm15, %v768_v2, %v770_v51  ;;  %v781_v55 = vsel %vm754_vm15, %v770_v51, 0.0  ;;  %v743_v56 = vsel %vm726_vm13, %v740_v40, %v742_v50  ;;  %vm1324_vm13 = vcmask 523520  }
 0x25e   : > { %v861_v57 = vsel %vm852_vm3, %v771_v53, 0.0  ;;  %v862_v58 = vsel %vm853_vm4, %v781_v55, 0.0  ;;  %v799_v59 = vsel %vm790_vm5, %v743_v56, 0.0  ;;  %vm1398_vm15 = vcmask 1041409  }
 0x25f   : > { %886 = vrot.lane.b32.xlu1 %v861_v57, %s1991_s28  ;;  %823 = vrot.lane.b32.xlu0 %v798_v49, %s1990_s27 }
 0x263   : > { %888 = vrot.lane.b32.xlu1 %v862_v58, %s1991_s28  ;;  %825 = vrot.lane.b32.xlu0 %v799_v59, %s1990_s27 }
 0x267   : > { %1899 = vrot.lane.b32.xlu0 %v2338_v60, %s1990_s27  ;;  %1904 = vrot.lane.b32.xlu1 %v2342_v61, %s1990_s27 }
 0x2b1   : > { %v810_v62 = vpop.permute.xlu1 %809 }
 0x2b2   : > { %v836_v1 = vadd.f32 %v810_v62, %v2169_v5 }
 0x2b5   : > { %v873_v63 = vpop.permute.xlu0 %872  ;;  %v812_v0 = vpop.permute.xlu1 %811 }
 0x2b6   : > { %v899_v4 = vadd.f32 %v873_v63, %v836_v1  ;;  %v837_v7 = vadd.f32 %v812_v0, %v2174_v12 }
 0x2b9   : > { %v915_v22 = vpop.permute.xlu0 %914  ;;  %v875_v23 = vpop.permute.xlu1 %874 }
 0x2ba   : > { %v900_v8 = vadd.f32 %v875_v23, %v837_v7  ;;  %v2350_v9 = vadd.f32 %v915_v22, %v899_v4 }
 0x2bc   : > { %v2352_v25 = vadd.f32 %v915_v22, %v900_v8  ;;  %v926_v26 = vmax.f32 %v2350_v9, 0.0 }
 0x2bd   : > { %v877_v10 = vpop.permute.xlu1 %876  ;;  %v814_v11 = vpop.permute.xlu0 %813 }
 0x2be   : > { %v927_v13 = vmax.f32 %v2352_v25, 0.0  ;;  %v838_v14 = vadd.f32 %v814_v11, %v2191_v29  ;;  %949 = vrot.lane.b32.xlu0 %v926_v26, %s1991_s28 }
 0x2c0   : > { %v901_v5 = vadd.f32 %v877_v10, %v838_v14  ;;  %951 = vrot.lane.b32.xlu1 %v927_v13, %s1991_s28 }
 0x2c1   : > { %v879_v12 = vpop.permute.xlu1 %878  ;;  %v816_v16 = vpop.permute.xlu0 %815 }
 0x2c2   : > { %v839_v17 = vadd.f32 %v816_v16, %v2215_v42  ;;  %v2364_v18 = vadd.f32 %v915_v22, %v901_v5  ;;  %v1663_v5 = vld [vmem:[%s2512_s4 + $0x1] ss:$0 sm:$0xff] }
 0x2c4   : > { %v902_v20 = vadd.f32 %v879_v12, %v839_v17  ;;  %v928_v21 = vmax.f32 %v2364_v18, 0.0 }
 0x2c5   : > { %v881_v24 = vpop.permute.xlu1 %880  ;;  %v818_v29 = vpop.permute.xlu0 %817 }
 0x2c6   : > { %v840_v27 = vadd.f32 %v818_v29, %v2236_v54  ;;  %953 = vrot.lane.b32.xlu0 %v928_v21, %s1991_s28  ;;  %v2371_v28 = vadd.f32 %v915_v22, %v902_v20 }
 0x2c8   : > { %v903_v30 = vadd.f32 %v881_v24, %v840_v27  ;;  %v929_v31 = vmax.f32 %v2371_v28, 0.0 }
 0x2c9   : > { %v883_v32 = vpop.permute.xlu1 %882  ;;  %v820_v42 = vpop.permute.xlu0 %819 }
 0x2ca   : > { %v841_v33 = vadd.f32 %v820_v42, %v2257_v3  ;;  %955 = vrot.lane.b32.xlu1 %v929_v31, %s1991_s28  ;;  %v2378_v34 = vadd.f32 %v915_v22, %v903_v30 }
 0x2cc   : > { %v904_v54 = vadd.f32 %v883_v32, %v841_v33  ;;  %v930_v35 = vmax.f32 %v2378_v34, 0.0 }
 0x2cd   : > { %v885_v37 = vpop.permute.xlu1 %884  ;;  %v822_v38 = vpop.permute.xlu0 %821 }
 0x2ce   : > { %v842_v39 = vadd.f32 %v822_v38, %v2278_v19  ;;  %957 = vrot.lane.b32.xlu0 %v930_v35, %s1991_s28  ;;  %v2385_v40 = vadd.f32 %v915_v22, %v904_v54 }
 0x2d0   : > { %v905_v3 = vadd.f32 %v885_v37, %v842_v39  ;;  %v931_v2 = vmax.f32 %v2385_v40, 0.0 }
 0x2d1   : > { %v887_v41 = vpop.permute.xlu1 %886  ;;  %v824_v43 = vpop.permute.xlu0 %823 }
 0x2d2   : > { %v843_v44 = vadd.f32 %v824_v43, %v2299_v36  ;;  %959 = vrot.lane.b32.xlu1 %v931_v2, %s1991_s28  ;;  %v2392_v45 = vadd.f32 %v915_v22, %v905_v3 }
 0x2d4   : > { %v906_v19 = vadd.f32 %v887_v41, %v843_v44  ;;  %v932_v46 = vmax.f32 %v2392_v45, 0.0 }
 0x2d5   : > { %v889_v48 = vpop.permute.xlu1 %888  ;;  %v826_v49 = vpop.permute.xlu0 %825 }
 0x2d6   : > { %v844_v50 = vadd.f32 %v826_v49, %v2319_v47  ;;  %961 = vrot.lane.b32.xlu0 %v932_v46, %s1991_s28  ;;  %v2399_v51 = vadd.f32 %v915_v22, %v906_v19 }
 0x2d8   : > { %v907_v36 = vadd.f32 %v889_v48, %v844_v50  ;;  %v933_v52 = vmax.f32 %v2399_v51, 0.0 }
 0x2d9   : > { %v1900_v53 = vpop.permute.xlu0 %1899  ;;  %v1905_v55 = vpop.permute.xlu1 %1904 }
 0x2da   : > { %963 = vrot.lane.b32.xlu1 %v933_v52, %s1991_s28  ;;  %v2405_v56 = vadd.f32 %v915_v22, %v907_v36  ;;  %v1902_v57 = vunpack.i.h.bf16 %v1900_v53  ;;  %v1901_v58 = vunpack.i.l.bf16 %v1900_v53  ;;  %v1907_v47 = vunpack.i.h.bf16 %v1905_v55 }
 0x2db   : > { %v1906_v59 = vunpack.i.l.bf16 %v1905_v55 }
 0x2dc   : > { %v934_v62 = vmax.f32 %v2405_v56, 0.0  ;;  %v1865_v63 = vpack.c.bf16 %v1902_v57, %v1901_v58 }
 0x2dd   : > { %v1868_v0 = vpack.c.bf16 %v1907_v47, %v1906_v59 }
 0x2de   : > { %965 = vrot.lane.b32.xlu0 %v934_v62, %s1991_s28  ;;  %1866 = vmatpush3.bf16.msra.mxu1 %v1865_v63 }
 0x2df   : > { %1867 = vmatprep.subr.bf16.mxu1 %v1987_v6 }
 0x2e2   : > { %1869 = vmatpush3.bf16.msra.mxu1 %v1868_v0 }
 0x330   : > { %v950_v1 = vpop.permute.xlu0 %949 }
 0x331   : > { %1812 = vmatmul.mubr.msk.f32.vlgmr.msra.gmra.mrb[12].mxu1 %vm461_vm12, %v950_v1 }
 0x332   : > { %1814 = vmatprep.mubr.msk.f32.mxu1 %vm1988_vm0, %v1989_v15  ;;  %v952_v4 = vpop.permute.xlu1 %951 }
 0x335   : > { %1815 = vmatmul.mubr.msk.f32.gmra.mrb[14].mxu1 %vm461_vm12, %v952_v4 }
 0x336   : > { %1817 = vmatprep.mubr.msk.f32.mxu1 %vm1988_vm0, %v1989_v15 }
 0x338   : > { %v954_v7 = vpop.permute.xlu0 %953 }
 0x339   : > { %1818 = vmatmul.mubr.msk.f32.gmra.mrb[16].mxu1 %vm461_vm12, %v954_v7 }
 0x33a   : > { %1820 = vmatprep.mubr.msk.f32.mxu1 %vm1988_vm0, %v1989_v15 }
 0x33c   : > { %v956_v22 = vpop.permute.xlu1 %955 }
 0x33d   : > { %1821 = vmatmul.mubr.msk.f32.gmra.mrb[18].mxu1 %vm461_vm12, %v956_v22 }
 0x33e   : > { %1823 = vmatprep.mubr.msk.f32.mxu1 %vm1988_vm0, %v1989_v15 }
 0x340   : > { %v958_v23 = vpop.permute.xlu0 %957 }
 0x341   : > { %1824 = vmatmul.mubr.msk.f32.gmra.mrb[20].mxu1 %vm461_vm12, %v958_v23 }
 0x342   : > { %1826 = vmatprep.mubr.msk.f32.mxu1 %vm1988_vm0, %v1989_v15 }
 0x344   : > { %v960_v8 = vpop.permute.xlu1 %959 }
 0x345   : > { %1827 = vmatmul.mubr.msk.f32.gmra.mrb[22].mxu1 %vm461_vm12, %v960_v8 }
 0x346   : > { %1829 = vmatprep.mubr.msk.f32.mxu1 %vm1988_vm0, %v1989_v15 }
 0x348   : > { %v962_v10 = vpop.permute.xlu0 %961 }
 0x349   : > { %1830 = vmatmul.mubr.msk.f32.gmra.mrb[24].mxu1 %vm461_vm12, %v962_v10 }
 0x34a   : > { %1832 = vmatprep.mubr.msk.f32.mxu1 %vm1988_vm0, %v1989_v15 }
 0x34c   : > { %v964_v11 = vpop.permute.xlu1 %963 }
 0x34d   : > { %1833 = vmatmul.mubr.msk.f32.gmra.mrb[26].mxu1 %vm461_vm12, %v964_v11 }
 0x34e   : > { %1835 = vmatprep.mubr.msk.f32.mxu1 %vm1988_vm0, %v1989_v15  ;;  %v1673_v15 = vld [vmem:[%s2512_s4 + $0x2] ss:$0 sm:$0xff]  ;;  %vm1134_vm0 = vcmask 130048  }
 0x350   : > { %v966_v14 = vpop.permute.xlu0 %965 }
 0x351   : > { %1836 = vmatmul.mubr.msk.f32.gmra.mrb[28].mxu1 %vm461_vm12, %v966_v14 }
 0x404   : > { %v1067_v12 = vpop.f32.mrb[12].mxu1 }
 0x405   : > { %v1068_v16 = vadd.f32 %v1663_v5, %v1067_v12  ;;  %v1813_v17 = vpop.f32.mrb[13].mxu1 }
 0x407   : > { %1918 = vtanh.f32 %v1068_v16 }
 0x408   : > { %v1072_v20 = vpop.f32.mrb[14].mxu1 }
 0x409   : > { %v1073_v24 = vadd.f32 %v1663_v5, %v1072_v20  ;;  %v1816_v29 = vpop.f32.mrb[15].mxu1 }
 0x40b   : > { %1920 = vtanh.f32 %v1073_v24 }
 0x40c   : > { %v1077_v27 = vpop.f32.mrb[16].mxu1 }
 0x40d   : > { %v1078_v30 = vadd.f32 %v1663_v5, %v1077_v27  ;;  %v1819_v32 = vpop.f32.mrb[17].mxu1 }
 0x40f   : > { %1922 = vtanh.f32 %v1078_v30 }
 0x410   : > { %v1082_v42 = vpop.f32.mrb[18].mxu1 }
 0x411   : > { %v1919_v33 = vpop.eup %1918  ;;  %v1083_v54 = vadd.f32 %v1663_v5, %v1082_v42  ;;  %v1822_v37 = vpop.f32.mrb[19].mxu1 }
 0x412   : > { %v1125_v38 = vmul.f32 %v1919_v33, %v1673_v15 }
 0x413   : > { %1924 = vtanh.f32 %v1083_v54 }
 0x414   : > { %v1087_v39 = vpop.f32.mrb[20].mxu1  ;;  %v2444_v3 = vsel %vm1134_vm0, %v1125_v38, 0.0 }
 0x415   : > { %v1921_v41 = vpop.eup %1920  ;;  %v1088_v43 = vadd.f32 %v1663_v5, %v1087_v39  ;;  %v1825_v44 = vpop.f32.mrb[21].mxu1 }
 0x416   : > { %v1126_v19 = vmul.f32 %v1921_v41, %v1673_v15 }
 0x417   : > { %1926 = vtanh.f32 %v1088_v43 }
 0x418   : > { %v1092_v48 = vpop.f32.mrb[22].mxu1  ;;  %v1138_v49 = vsel %vm1134_vm0, %v1126_v19, 0.0 }
 0x419   : > { %v1923_v50 = vpop.eup %1922  ;;  %v1093_v36 = vadd.f32 %v1663_v5, %v1092_v48  ;;  %v1828_v53 = vpop.f32.mrb[23].mxu1 }
 0x41a   : > { %v1127_v55 = vmul.f32 %v1923_v50, %v1673_v15 }
 0x41b   : > { %1928 = vtanh.f32 %v1093_v36 }
 0x41c   : > { %v1097_v57 = vpop.f32.mrb[24].mxu1  ;;  %v1141_v58 = vsel %vm1134_vm0, %v1127_v55, 0.0 }
 0x41d   : > { %v1925_v47 = vpop.eup %1924  ;;  %v1098_v59 = vadd.f32 %v1663_v5, %v1097_v57  ;;  %v1831_v63 = vpop.f32.mrb[25].mxu1 }
 0x41e   : > { %v1128_v0 = vmul.f32 %v1925_v47, %v1673_v15 }
 0x41f   : > { %1930 = vtanh.f32 %v1098_v59 }
 0x420   : > { %v1102_v1 = vpop.f32.mrb[26].mxu1  ;;  %v1144_v4 = vsel %vm1134_vm0, %v1128_v0, 0.0 }
 0x421   : > { %v1927_v7 = vpop.eup %1926  ;;  %v1103_v22 = vadd.f32 %v1663_v5, %v1102_v1  ;;  %v1834_v23 = vpop.f32.mrb[27].mxu1 }
 0x422   : > { %v1129_v8 = vmul.f32 %v1927_v7, %v1673_v15 }
 0x423   : > { %1932 = vtanh.f32 %v1103_v22 }
 0x424   : > { %v1107_v10 = vpop.f32.mrb[28].mxu1  ;;  %v1147_v11 = vsel %vm1134_vm0, %v1129_v8, 0.0 }
 0x425   : > { %v1929_v14 = vpop.eup %1928  ;;  %v1108_v12 = vadd.f32 %v1663_v5, %v1107_v10  ;;  %1148 = vadd.xlane.f32.xlu1 %v1147_v11  ;;  %v1837_v16 = vpop.f32.mrb[29].mxu1 }
 0x426   : > { %v1130_v17 = vmul.f32 %v1929_v14, %v1673_v15 }
 0x427   : > { %1934 = vtanh.f32 %v1108_v12 }
 0x428   : > { %v1150_v20 = vsel %vm1134_vm0, %v1130_v17, 0.0 }
 0x429   : > { %v1931_v24 = vpop.eup %1930  ;;  %1151 = vadd.xlane.f32.xlu0 %v1150_v20 }
 0x42a   : > { %v1131_v29 = vmul.f32 %v1931_v24, %v1673_v15 }
 0x42c   : > { %v1153_v27 = vsel %vm1134_vm0, %v1131_v29, 0.0 }
 0x42d   : > { %v1933_v30 = vpop.eup %1932  ;;  %1154 = vadd.xlane.f32.xlu0 %v1153_v27 }
 0x42e   : > { %v1132_v32 = vmul.f32 %v1933_v30, %v1673_v15 }
 0x430   : > { %v1156_v42 = vsel %vm1134_vm0, %v1132_v32, 0.0 }
 0x431   : > { %v1935_v33 = vpop.eup %1934  ;;  %1157 = vadd.xlane.f32.xlu1 %v1156_v42 }
 0x432   : > { %v1133_v54 = vmul.f32 %v1935_v33, %v1673_v15 }
 0x434   : > { %v1159_v5 = vsel %vm1134_vm0, %v1133_v54, 0.0 }
 0x435   : > { %1160 = vadd.xlane.f32.xlu0 %v1159_v5 }
 0x442   : > { %1909 = vrot.lane.b32.xlu1 %v2338_v60, %s1992_s10 }
 0x44b   : > { %1914 = vrot.lane.b32.xlu0 %v2342_v61, %s1992_s10 }
 0x46a   : > { %1139 = vadd.xlane.f32.xlu0 %v1138_v49 }
 0x46e   : > { %1142 = vadd.xlane.f32.xlu0 %v1141_v58 }
 0x472   : > { %1145 = vadd.xlane.f32.xlu0 %v1144_v4 }
 0x4b2   : > { %v1149_v37 = vpop.xlane.xlu1 %1148 }
 0x4b3   : > { %v1186_v38 = vrot.slane %v1149_v37, 4 }
 0x4b5   : > { %v1187_v39 = vmax.f32 %v1149_v37, %v1186_v38 }
 0x4b6   : > { %v1152_v41 = vpop.xlane.xlu0 %1151 }
 0x4b7   : > { %v1188_v43 = vrot.slane %v1187_v39, 2  ;;  %v1192_v44 = vrot.slane %v1152_v41, 4 }
 0x4b9   : > { %v1189_v19 = vmax.f32 %v1187_v39, %v1188_v43  ;;  %v1193_v48 = vmax.f32 %v1152_v41, %v1192_v44 }
 0x4ba   : > { %v1155_v15 = vpop.xlane.xlu0 %1154 }
 0x4bb   : > { %v1190_v50 = vrot.slane %v1189_v19, 1  ;;  %v1194_v36 = vrot.slane %v1193_v48, 2  ;;  %v1198_v53 = vrot.slane %v1155_v15, 4 }
 0x4bd   : > { %v1191_v55 = vmax.f32 %v1189_v19, %v1190_v50  ;;  %v1195_v57 = vmax.f32 %v1193_v48, %v1194_v36  ;;  %v1199_v61 = vmax.f32 %v1155_v15, %v1198_v53 }
 0x4be   : > { %v1158_v47 = vpop.xlane.xlu1 %1157 }
 0x4bf   : > { %v1220_v60 = vsub.f32 %v1149_v37, %v1191_v55  ;;  %v1196_v49 = vrot.slane %v1195_v57, 1  ;;  %v1200_v58 = vrot.slane %v1199_v61, 2  ;;  %v1204_v59 = vrot.slane %v1158_v47, 4 }
 0x4c1   : > { %v1233_v63 = vmul.f32 1.442695, %v1220_v60  ;;  %v1197_v0 = vmax.f32 %v1195_v57, %v1196_v49  ;;  %v1201_v1 = vmax.f32 %v1199_v61, %v1200_v58  ;;  %v1205_v4 = vmax.f32 %v1158_v47, %v1204_v59 }
 0x4c2   : > { %v1161_v7 = vpop.xlane.xlu0 %1160  ;;  %v1910_v36 = vpop.permute.xlu1 %1909 }
 0x4c3   : > { %1936 = vpow2.f32 %v1233_v63  ;;  %v1221_v22 = vsub.f32 %v1152_v41, %v1197_v0  ;;  %v1202_v23 = vrot.slane %v1201_v1, 1  ;;  %v1206_v8 = vrot.slane %v1205_v4, 2 }
 0x4c4   : > { %v1210_v10 = vrot.slane %v1161_v7, 4  ;;  %v1911_v58 = vunpack.i.l.bf16 %v1910_v36 }
 0x4c5   : > { %v1235_v11 = vmul.f32 1.442695, %v1221_v22  ;;  %v1203_v14 = vmax.f32 %v1201_v1, %v1202_v23  ;;  %v1207_v12 = vmax.f32 %v1205_v4, %v1206_v8 }
 0x4c6   : > { %v1211_v16 = vmax.f32 %v1161_v7, %v1210_v10  ;;  %v1915_v61 = vpop.permute.xlu0 %1914 }
 0x4c7   : > { %1938 = vpow2.f32 %v1235_v11  ;;  %v1222_v17 = vsub.f32 %v1155_v15, %v1203_v14  ;;  %v1208_v20 = vrot.slane %v1207_v12, 1  ;;  %v1917_v60 = vunpack.i.h.bf16 %v1915_v61 }
 0x4c8   : > { %v1212_v24 = vrot.slane %v1211_v16, 2  ;;  %v1916_v49 = vunpack.i.l.bf16 %v1915_v61 }
 0x4c9   : > { %v1237_v29 = vmul.f32 1.442695, %v1222_v17  ;;  %v1209_v27 = vmax.f32 %v1207_v12, %v1208_v20 }
 0x4ca   : > { %v1213_v30 = vmax.f32 %v1211_v16, %v1212_v24  ;;  %v1874_v8 = vpack.c.bf16 %v1917_v60, %v1916_v49 }
 0x4cb   : > { %1940 = vpow2.f32 %v1237_v29  ;;  %v1223_v32 = vsub.f32 %v1158_v47, %v1209_v27  ;;  %v1912_v47 = vunpack.i.h.bf16 %v1910_v36 }
 0x4cc   : > { %v1214_v42 = vrot.slane %v1213_v30, 1 }
 0x4cd   : > { %v1937_v33 = vpop.eup %1936  ;;  %v1239_v54 = vmul.f32 1.442695, %v1223_v32  ;;  %v1871_v4 = vpack.c.bf16 %v1912_v47, %v1911_v58 }
 0x4ce   : > { %v1267_v5 = vrot.slane %v1937_v33, 4  ;;  %v1215_v37 = vmax.f32 %v1213_v30, %v1214_v42 }
 0x4cf   : > { %1942 = vpow2.f32 %v1239_v54  ;;  %1872 = vmatpush3.bf16.msra.mxu0 %v1871_v4 }
 0x4d0   : > { %v1268_v38 = vadd.f32 %v1937_v33, %v1267_v5  ;;  %v1224_v39 = vsub.f32 %v1161_v7, %v1215_v37  ;;  %1873 = vmatprep.subr.bf16.mxu0 %v1987_v6 }
 0x4d1   : > { %v1939_v41 = vpop.eup %1938 }
 0x4d2   : > { %v1269_v43 = vrot.slane %v1268_v38, 2  ;;  %v1273_v44 = vrot.slane %v1939_v41, 4  ;;  %v1241_v19 = vmul.f32 1.442695, %v1224_v39 }
 0x4d3   : > { %1875 = vmatpush3.bf16.msra.mxu0 %v1874_v8 }
 0x4d4   : > { %v1270_v48 = vadd.f32 %v1269_v43, %v1268_v38  ;;  %v1274_v15 = vadd.f32 %v1939_v41, %v1273_v44  ;;  %1944 = vpow2.f32 %v1241_v19 }
 0x4d5   : > { %v1941_v50 = vpop.eup %1940 }
 0x4d6   : > { %v1271_v53 = vrot.slane %v1270_v48, 1  ;;  %v1275_v55 = vrot.slane %v1274_v15, 2  ;;  %v1279_v57 = vrot.slane %v1941_v50, 4 }
 0x4d8   : > { %v1272_v59 = vadd.f32 %v1271_v53, %v1270_v48  ;;  %v1276_v63 = vadd.f32 %v1275_v55, %v1274_v15  ;;  %v1280_v0 = vadd.f32 %v1941_v50, %v1279_v57 }
 0x4d9   : > { %v1943_v1 = vpop.eup %1942 }
 0x4da   : > { %v1277_v7 = vrot.slane %v1276_v63, 1  ;;  %v1281_v22 = vrot.slane %v1280_v0, 2  ;;  %v1285_v23 = vrot.slane %v1943_v1, 4  ;;  %1946 = vrcp.f32 %v1272_v59 }
 0x4dc   : > { %v1278_v10 = vadd.f32 %v1277_v7, %v1276_v63  ;;  %v1282_v11 = vadd.f32 %v1281_v22, %v1280_v0  ;;  %v1286_v14 = vadd.f32 %v1943_v1, %v1285_v23 }
 0x4de   : > { %v1945_v12 = vpop.eup %1944  ;;  %v1287_v16 = vrot.slane %v1286_v14, 2  ;;  %v1283_v17 = vrot.slane %v1282_v11, 1  ;;  %1948 = vrcp.f32 %v1278_v10 }
 0x4df   : > { %v1291_v20 = vrot.slane %v1945_v12, 4 }
 0x4e0   : > { %v1284_v24 = vadd.f32 %v1283_v17, %v1282_v11  ;;  %v1288_v29 = vadd.f32 %v1287_v16, %v1286_v14 }
 0x4e1   : > { %v1292_v27 = vadd.f32 %v1945_v12, %v1291_v20 }
 0x4e2   : > { %v1289_v30 = vrot.slane %v1288_v29, 1  ;;  %1950 = vrcp.f32 %v1284_v24 }
 0x4e3   : > { %v1293_v32 = vrot.slane %v1292_v27, 2 }
 0x4e4   : > { %v1947_v42 = vpop.eup %1946  ;;  %v1290_v54 = vadd.f32 %v1289_v30, %v1288_v29 }
 0x4e5   : > { %v1294_v5 = vadd.f32 %v1293_v32, %v1292_v27  ;;  %v1306_v37 = vmul.f32 %v1947_v42, %v1937_v33 }
 0x4e6   : > { %1952 = vrcp.f32 %v1290_v54 }
 0x4e7   : > { %v1295_v38 = vrot.slane %v1294_v5, 1  ;;  %v1319_v6 = vmul.f32 %v1306_v37, %v930_v35 }
 0x4e8   : > { %v1949_v39 = vpop.eup %1948 }
 0x4e9   : > { %v1296_v43 = vadd.f32 %v1295_v38, %v1294_v5  ;;  %v1308_v44 = vmul.f32 %v1949_v39, %v1939_v41  ;;  %v1353_v48 = vsel %vm1324_vm13, %v1319_v6, 0.0  ;;  %v1674_v38 = vld [vmem:[%s2512_s4 + $0x3] ss:$0 sm:$0xff] }
 0x4ea   : > { %v1354_v33 = vrot.slane %v1353_v48, 4 }
 0x4eb   : > { %1954 = vrcp.f32 %v1296_v43  ;;  %v1320_v19 = vmul.f32 %v1308_v44, %v931_v2  ;;  %v1676_v44 = vld [vmem:[%s2512_s4 + $0x4] ss:$0 sm:$0xff] }
 0x4ec   : > { %v1951_v15 = vpop.eup %1950  ;;  %v1355_v47 = vadd.f32 %v1354_v33, %v1353_v48 }
 0x4ed   : > { %v1310_v36 = vmul.f32 %v1951_v15, %v1941_v50  ;;  %v1360_v53 = vsel %vm1324_vm13, %v1320_v19, 0.0 }
 0x4ee   : > { %v1361_v55 = vrot.slane %v1360_v53, 4  ;;  %v1356_v63 = vrot.slane %v1355_v47, 2 }
 0x4ef   : > { %v1321_v34 = vmul.f32 %v1310_v36, %v932_v46 }
 0x4f0   : > { %v1953_v35 = vpop.eup %1952  ;;  %v1362_v57 = vadd.f32 %v1361_v55, %v1360_v53  ;;  %v1357_v22 = vadd.f32 %v1356_v63, %v1355_v47 }
 0x4f1   : > { %v1312_v61 = vmul.f32 %v1953_v35, %v1943_v1  ;;  %v1367_v41 = vsel %vm1324_vm13, %v1321_v34, 0.0 }
 0x4f2   : > { %v1368_v60 = vrot.slane %v1367_v41, 4  ;;  %v1363_v2 = vrot.slane %v1362_v57, 2  ;;  %v1358_v16 = vrot.slane %v1357_v22, 1 }
 0x4f3   : > { %v1322_v40 = vmul.f32 %v1312_v61, %v933_v52 }
 0x4f4   : > { %v1369_v49 = vadd.f32 %v1368_v60, %v1367_v41  ;;  %v1364_v1 = vadd.f32 %v1363_v2, %v1362_v57  ;;  %v1359_v56 = vadd.f32 %v1358_v16, %v1357_v22 }
 0x4f5   : > { %v1955_v50 = vpop.eup %1954  ;;  %v1374_v58 = vsel %vm1324_vm13, %v1322_v40, 0.0 }
 0x4f6   : > { %v1314_v59 = vmul.f32 %v1955_v50, %v1945_v12  ;;  %v1370_v0 = vrot.slane %v1369_v49, 2  ;;  %v1375_v45 = vrot.slane %v1374_v58, 4  ;;  %v1365_v8 = vrot.slane %v1364_v1, 1 }
 0x4f8   : > { %v1323_v46 = vmul.f32 %v1314_v59, %v934_v62  ;;  %v1371_v4 = vadd.f32 %v1370_v0, %v1369_v49  ;;  %v1376_v7 = vadd.f32 %v1375_v45, %v1374_v58  ;;  %v1366_v20 = vadd.f32 %v1365_v8, %v1364_v1  ;;  %v1140_v45 = vpop.xlane.xlu0 %1139 }
 0x4fa   : > { %v1381_v23 = vsel %vm1324_vm13, %v1323_v46, 0.0  ;;  %v1377_v51 = vrot.slane %v1376_v7, 2  ;;  %v1372_v10 = vrot.slane %v1371_v4, 1  ;;  %v1399_v30 = vsel %vm1398_vm15, %v1366_v20, %v1359_v56 }
 0x4fb   : > { %v1382_v52 = vrot.slane %v1381_v23, 4 }
 0x4fc   : > { %v1378_v11 = vadd.f32 %v1377_v51, %v1376_v7  ;;  %v1373_v24 = vadd.f32 %v1372_v10, %v1371_v4  ;;  %v1143_v22 = vpop.xlane.xlu0 %1142  ;;  %v1168_v10 = vrot.slane %v1140_v45, 4 }
 0x4fd   : > { %v1383_v14 = vadd.f32 %v1382_v52, %v1381_v23 }
 0x4fe   : > { %v1379_v12 = vrot.slane %v1378_v11, 1  ;;  %v1401_v42 = vsel %vm1400_vm6, %v1373_v24, %v1399_v30 }
 0x4ff   : > { %v1384_v17 = vrot.slane %v1383_v14, 2 }
 0x500   : > { %v1380_v62 = vadd.f32 %v1379_v12, %v1378_v11  ;;  %v1146_v8 = vpop.xlane.xlu0 %1145 }
 0x501   : > { %v1385_v29 = vadd.f32 %v1384_v17, %v1383_v14  ;;  %v1174_v14 = vrot.slane %v1143_v22, 4  ;;  %v1180_v12 = vrot.slane %v1146_v8, 4  ;;  %v1169_v17 = vmax.f32 %v1140_v45, %v1168_v10 }
 0x502   : > { %v1403_v54 = vsel %vm1402_vm7, %v1380_v62, %v1401_v42 }
 0x503   : > { %v1386_v27 = vrot.slane %v1385_v29, 1  ;;  %v1175_v24 = vmax.f32 %v1143_v22, %v1174_v14  ;;  %v1170_v56 = vrot.slane %v1169_v17, 2 }
 0x505   : > { %v1387_v32 = vadd.f32 %v1386_v27, %v1385_v29  ;;  %v1181_v29 = vmax.f32 %v1146_v8, %v1180_v12  ;;  %v1176_v27 = vrot.slane %v1175_v24, 2 }
 0x507   : > { %v1405_v5 = vsel %vm1404_vm8, %v1387_v32, %v1403_v54  ;;  %v1182_v30 = vrot.slane %v1181_v29, 2  ;;  %v1171_v32 = vmax.f32 %v1169_v17, %v1170_v56  ;;  %v1177_v54 = vmax.f32 %v1175_v24, %v1176_v27 }
 0x508   : > { %1406 = vrot.lane.b32.xlu1 %v1405_v5, %s1991_s28 }
 0x509   : > { %v1183_v5 = vmax.f32 %v1181_v29, %v1182_v30 }
 0x57a   : > { %v1407_v37 = vpop.permute.xlu1 %1406 }
 0x57b   : > { %1847 = vmatmul.mubr.msk.f32.vlgmr.msra.gmra.mrb[24].mxu0 %vm461_vm12, %v1407_v37  ;;  %vm1503_vm12 = vcmask 1044480  }
 0x64e   : > { %v1488_v6 = vpop.f32.mrb[24].mxu0 }
 0x64f   : > { %v1489_v39 = vadd.f32 %v1674_v38, %v1488_v6  ;;  %v1848_v43 = vpop.f32.mrb[25].mxu0  ;;  %v1178_v6 = vrot.slane %v1177_v54, 1 }
 0x651   : > { %1956 = vtanh.f32 %v1489_v39  ;;  %v1184_v39 = vrot.slane %v1183_v5, 1 }
 0x65b   : > { %v1957_v19 = vpop.eup %1956 }
 0x65c   : > { %v1498_v48 = vmul.f32 %v1957_v19, %v1676_v44  ;;  %v1179_v19 = vmax.f32 %v1177_v54, %v1178_v6 }
 0x65e   : > { %v1500_v15 = vsel %vm1499_vm9, %v1498_v48, 0.0  ;;  %v1185_v48 = vmax.f32 %v1183_v5, %v1184_v39 }
 0x65f   : > { %1501 = vadd.xlane.f32.xlu1 %v1500_v15 }
 0x663   : > { %1136 = vadd.xlane.f32.xlu1 %v2444_v3 }
 0x6ec   : > { %v1502_v36 = vpop.xlane.xlu1 %1501 }
 0x6ed   : > { %v1504_v53 = vsel %vm1503_vm12, %v1502_v36, -inf }
 0x6ee   : > { %v1505_v33 = vrot.slane %v1504_v53, 4 }
 0x6f0   : > { %v1506_v55 = vmax.f32 %v1504_v53, %v1505_v33  ;;  %v1137_v16 = vpop.xlane.xlu1 %1136  ;;  %v1218_v53 = vsub.f32 %v1143_v22, %v1179_v19  ;;  %v1219_v33 = vsub.f32 %v1146_v8, %v1185_v48 }
 0x6f1   : > { %v1162_v20 = vrot.slane %v1137_v16, 4 }
 0x6f2   : > { %v1507_v34 = vrot.slane %v1506_v55, 2 }
 0x6f3   : > { %v1163_v62 = vmax.f32 %v1137_v16, %v1162_v20 }
 0x6f4   : > { %v1508_v35 = vmax.f32 %v1506_v55, %v1507_v34 }
 0x6f5   : > { %v1164_v42 = vrot.slane %v1163_v62, 2 }
 0x6f6   : > { %v1509_v57 = vrot.slane %v1508_v35, 1 }
 0x6f7   : > { %v1165_v38 = vmax.f32 %v1163_v62, %v1164_v42 }
 0x6f8   : > { %v1510_v61 = vmax.f32 %v1508_v35, %v1509_v57  ;;  %v1229_v35 = vmul.f32 1.442695, %v1218_v53  ;;  %v1231_v57 = vmul.f32 1.442695, %v1219_v33 }
 0x6f9   : > { %v1166_v44 = vrot.slane %v1165_v38, 1 }
 0x6fa   : > { %v1511_v41 = vsub.f32 %v1502_v36, %v1510_v61 }
 0x6fb   : > { %v1167_v36 = vmax.f32 %v1165_v38, %v1166_v44 }
 0x6fc   : > { %v1512_v47 = vmul.f32 1.442695, %v1511_v41 }
 0x6fd   : > { %v1216_v34 = vsub.f32 %v1137_v16, %v1167_v36 }
 0x6fe   : > { %1958 = vpow2.f32 %v1512_v47 }
 0x6ff   : > { %v1225_v61 = vmul.f32 1.442695, %v1216_v34 }
 0x708   : > { %v1959_v60 = vpop.eup %1958 }
 0x709   : > { %v1514_v40 = vsel %vm1503_vm12, %v1959_v60, 0.0 }
 0x70a   : > { %v1515_v2 = vrot.slane %v1514_v40, 4 }
 0x70c   : > { %v1516_v49 = vadd.f32 %v1515_v2, %v1514_v40 }
 0x70e   : > { %v1517_v50 = vrot.slane %v1516_v49, 2 }
 0x710   : > { %v1518_v58 = vadd.f32 %v1517_v50, %v1516_v49 }
 0x712   : > { %v1519_v59 = vrot.slane %v1518_v58, 1 }
 0x714   : > { %v1520_v3 = vadd.f32 %v1519_v59, %v1518_v58 }
 0x716   : > { %1960 = vrcp.f32 %v1520_v3 }
 0x720   : > { %v1961_v63 = vpop.eup %1960 }
 0x721   : > { %v1522_v0 = vmul.f32 %v1961_v63, %v1959_v60 }
 0x723   : > { %v1524_v46 = vmul.f32 %v1522_v0, %v1407_v37  ;;  %v1172_v37 = vrot.slane %v1171_v32, 1 }
 0x725   : > { %v1526_v1 = vsel %vm1525_vm10, %v1524_v46, 0.0  ;;  %v1173_v43 = vmax.f32 %v1171_v32, %v1172_v37 }
 0x726   : > { %v1527_v4 = vrot.slane %v1526_v1, 4 }
 0x727   : > { %v1217_v15 = vsub.f32 %v1140_v45, %v1173_v43 }
 0x728   : > { %v1528_v7 = vadd.f32 %v1527_v4, %v1526_v1 }
 0x729   : > { %v1227_v55 = vmul.f32 1.442695, %v1217_v15 }
 0x72a   : > { %v1529_v23 = vrot.slane %v1528_v7, 2 }
 0x72b   : > { %1962 = vpow2.f32 %v1227_v55 }
 0x72c   : > { %v1530_v51 = vadd.f32 %v1529_v23, %v1528_v7  ;;  %1964 = vpow2.f32 %v1229_v35 }
 0x72d   : > { %1966 = vpow2.f32 %v1231_v57 }
 0x72e   : > { %v1531_v52 = vrot.slane %v1530_v51, 1  ;;  %1968 = vpow2.f32 %v1225_v61 }
 0x730   : > { %v1532_v11 = vadd.f32 %v1531_v52, %v1530_v51 }
 0x732   : > { %1534 = vrot.lane.b32.xlu1 %v1532_v11, %s1990_s27 }
 0x735   : > { %v1963_v41 = vpop.eup %1962 }
 0x736   : > { %v1965_v47 = vpop.eup %1964  ;;  %v1249_v40 = vrot.slane %v1963_v41, 4 }
 0x737   : > { %v1967_v60 = vpop.eup %1966  ;;  %v1255_v49 = vrot.slane %v1965_v47, 4 }
 0x738   : > { %v1969_v2 = vpop.eup %1968  ;;  %v1261_v50 = vrot.slane %v1967_v60, 4  ;;  %v1250_v58 = vadd.f32 %v1963_v41, %v1249_v40 }
 0x739   : > { %v1243_v59 = vrot.slane %v1969_v2, 4  ;;  %v1256_v3 = vadd.f32 %v1965_v47, %v1255_v49 }
 0x73a   : > { %v1262_v63 = vadd.f32 %v1967_v60, %v1261_v50  ;;  %v1251_v0 = vrot.slane %v1250_v58, 2 }
 0x73b   : > { %v1244_v45 = vadd.f32 %v1969_v2, %v1243_v59  ;;  %v1257_v46 = vrot.slane %v1256_v3, 2 }
 0x73c   : > { %v1263_v1 = vrot.slane %v1262_v63, 2  ;;  %v1252_v7 = vadd.f32 %v1251_v0, %v1250_v58 }
 0x73d   : > { %v1245_v4 = vrot.slane %v1244_v45, 2  ;;  %v1258_v22 = vadd.f32 %v1257_v46, %v1256_v3 }
 0x73e   : > { %v1264_v23 = vadd.f32 %v1263_v1, %v1262_v63  ;;  %v1253_v52 = vrot.slane %v1252_v7, 1 }
 0x73f   : > { %v1246_v51 = vadd.f32 %v1245_v4, %v1244_v45  ;;  %v1259_v8 = vrot.slane %v1258_v22, 1 }
 0x740   : > { %v1265_v10 = vrot.slane %v1264_v23, 1  ;;  %v1254_v14 = vadd.f32 %v1253_v52, %v1252_v7 }
 0x741   : > { %v1247_v11 = vrot.slane %v1246_v51, 1  ;;  %v1260_v16 = vadd.f32 %v1259_v8, %v1258_v22 }
 0x742   : > { %v1266_v12 = vadd.f32 %v1265_v10, %v1264_v23  ;;  %1970 = vrcp.f32 %v1254_v14 }
 0x743   : > { %v1248_v17 = vadd.f32 %v1247_v11, %v1246_v51  ;;  %1972 = vrcp.f32 %v1260_v16 }
 0x744   : > { %1974 = vrcp.f32 %v1266_v12 }
 0x745   : > { %1976 = vrcp.f32 %v1248_v17 }
 0x74c   : > { %v1971_v20 = vpop.eup %1970 }
 0x74d   : > { %v1973_v24 = vpop.eup %1972  ;;  %v1300_v62 = vmul.f32 %v1971_v20, %v1963_v41 }
 0x74e   : > { %v1975_v29 = vpop.eup %1974  ;;  %v1302_v27 = vmul.f32 %v1973_v24, %v1965_v47 }
 0x74f   : > { %v1977_v56 = vpop.eup %1976  ;;  %v1304_v30 = vmul.f32 %v1975_v29, %v1967_v60  ;;  %v1316_v42 = vmul.f32 %v1300_v62, %v927_v13 }
 0x750   : > { %v1298_v32 = vmul.f32 %v1977_v56, %v1969_v2  ;;  %v1317_v54 = vmul.f32 %v1302_v27, %v928_v21 }
 0x751   : > { %v1318_v5 = vmul.f32 %v1304_v30, %v929_v31  ;;  %v1332_v38 = vsel %vm1324_vm13, %v1316_v42, 0.0 }
 0x752   : > { %v1315_v37 = vmul.f32 %v1298_v32, %v926_v26  ;;  %v1339_v6 = vsel %vm1324_vm13, %v1317_v54, 0.0  ;;  %v1333_v44 = vrot.slane %v1332_v38, 4 }
 0x753   : > { %v1346_v39 = vsel %vm1324_vm13, %v1318_v5, 0.0  ;;  %v1340_v25 = vrot.slane %v1339_v6, 4 }
 0x754   : > { %v1325_v43 = vsel %vm1324_vm13, %v1315_v37, 0.0  ;;  %v1347_v13 = vrot.slane %v1346_v39, 4  ;;  %v1334_v18 = vadd.f32 %v1333_v44, %v1332_v38 }
 0x755   : > { %v1326_v19 = vrot.slane %v1325_v43, 4  ;;  %v1341_v21 = vadd.f32 %v1340_v25, %v1339_v6 }
 0x756   : > { %v1348_v48 = vadd.f32 %v1347_v13, %v1346_v39  ;;  %v1335_v31 = vrot.slane %v1334_v18, 2 }
 0x757   : > { %v1327_v28 = vadd.f32 %v1326_v19, %v1325_v43  ;;  %v1342_v15 = vrot.slane %v1341_v21, 2 }
 0x758   : > { %v1349_v9 = vrot.slane %v1348_v48, 2  ;;  %v1336_v36 = vadd.f32 %v1335_v31, %v1334_v18 }
 0x759   : > { %v1328_v26 = vrot.slane %v1327_v28, 2  ;;  %v1343_v53 = vadd.f32 %v1342_v15, %v1341_v21 }
 0x75a   : > { %v1350_v33 = vadd.f32 %v1349_v9, %v1348_v48  ;;  %v1337_v34 = vrot.slane %v1336_v36, 1 }
 0x75b   : > { %v1329_v55 = vadd.f32 %v1328_v26, %v1327_v28  ;;  %v1344_v35 = vrot.slane %v1343_v53, 1 }
 0x75c   : > { %v1351_v57 = vrot.slane %v1350_v33, 1  ;;  %v1338_v41 = vadd.f32 %v1337_v34, %v1336_v36 }
 0x75d   : > { %v1330_v61 = vrot.slane %v1329_v55, 1  ;;  %v1345_v47 = vadd.f32 %v1344_v35, %v1343_v53 }
 0x75e   : > { %v1352_v60 = vadd.f32 %v1351_v57, %v1350_v33 }
 0x75f   : > { %v1331_v2 = vadd.f32 %v1330_v61, %v1329_v55 }
 0x7a4   : > { %v1535_v40 = vpop.permute.xlu1 %1534 }
 0x7a5   : > { %v1538_v49 = vmul.f32 %v1535_v40, %v1338_v41  ;;  %v1539_v50 = vmul.f32 %v1535_v40, %v1345_v47  ;;  %v1540_v58 = vmul.f32 %v1535_v40, %v1352_v60  ;;  %v1537_v59 = vmul.f32 %v1535_v40, %v1331_v2 }
 0x7a7   : > { %v1545_v3 = vrot.slane %v1538_v49, 7  ;;  %v1547_v63 = vrot.slane %v1539_v50, 6  ;;  %v1549_v45 = vrot.slane %v1540_v58, 5 }
 0x7a9   : > { %v1546_v0 = vsel %vm1398_vm15, %v1545_v3, %v1537_v59 }
 0x7aa   : > { %v1548_v46 = vsel %vm1400_vm6, %v1547_v63, %v1546_v0 }
 0x7ab   : > { %v1550_v1 = vsel %vm1402_vm7, %v1549_v45, %v1548_v46 }
 0x7ac   : > { %1551 = vrot.lane.b32.xlu0 %v1550_v1, %s1991_s28 }
 0x81e   : > { %v1552_v4 = vpop.permute.xlu0 %1551 }
 0x81f   : > { %v1555_v7 = vsel %vm1554_vm11, %v1552_v4, 0.0 }
 0x820   : > { %1556 = vadd.xlane.f32.xlu1 %v1555_v7 }
 0x8ad   : > { %v1557_v22 = vpop.xlane.xlu1 %1556 }
 0x8ae   : > { %1559 = vst.msk [vmem:[%s242_s20] sm:$0xf] %vm1558_vm14, %v1557_v22 }
 0x8af PF: > { %s15_s18 = sadd.s32 1, %s1984_s18  }
 0x8b0   : > { %p12_p4 = scmp.ge.s32.totalorder %s15_s18, 4  }
 0x8b2   :  { %14 = sbr.rel (!%p12_p4) target bundleno = 1 (0x1), region = 73 }

</bundles_post_ra>
